<compile_context>
chip_gen: v5e
topology: v5e:2x2
jax: 0.10.0
libtpu: 0.0.40
codegen_flags: <defaults>
</compile_context>

<pallas_src>
import jax
import jax.numpy as jnp
import numpy as np
from jax.experimental import pallas as pl
from jax.experimental.pallas import tpu as pltpu

KSIZE = 7
PAD = KSIZE // 2


def _round_down(a, b):
    return (a // b) * b


def _round_up(a, b):
    return ((a + b - 1) // b) * b


def _pick_blocks(N, CHW, HW, itemsize):
    """Pick (tb rows per grid step, rb rows per in-kernel chunk, vmem capacity)."""
    # rb: rows per register-resident chunk -- keep an (rb, HW) f32 temp at ~<=4 vregs.
    rb = max(8, min(32, _round_down(4096 // max(HW, 1), 8)))

    try:
        vmem_cap = int(pltpu.get_tpu_info().vmem_capacity_bytes)
    except Exception:
        vmem_cap = 64 << 20  # v7x per-TensorCore VMEM; conservative fallback

    usable = int(vmem_cap * 0.6)             # headroom for Mosaic internals / slack
    bytes_per_row = 2 * 2 * CHW * itemsize   # (in + out), each double-buffered
    tb_cap = max(8, _round_down(usable // max(bytes_per_row, 1), 8))

    if N <= max(16, rb):
        tb = N
        rb = rb if (tb >= rb and tb % rb == 0) else tb
    else:
        tb = min(N, tb_cap)
        # Keep >=2 grid steps so the "parallel" batch axis can be split across
        # both v7x TensorCores (negligible cost on 1-TC v5e/v6e).
        tb = min(tb, _round_up(pl.cdiv(N, 2), 8))
        tb = max(rb, _round_down(tb, rb))
    return tb, rb, vmem_cap


def spatial_attention(x, weight):
    """JAX/Pallas equivalent of SpatialAttention.forward for inputs with >=3 trailing dims.

    x      : (..., C, H, W)
    weight : (1, 2, KSIZE, KSIZE) conv weight (OIHW, no bias)
    returns: (x.shape[0], x.shape[1], -1, H, W)  -- matching the PyTorch .view at the end
    """
    # TODO(synk): the PyTorch `len(x.size()) <= 2` branch calls an undefined self.conv2d; not implemented.
    C, H, W = x.shape[-3], x.shape[-2], x.shape[-1]
    HW = H * W
    CHW = C * HW
    xr = x.reshape(-1, CHW)  # contiguous view of (..., C, H, W); free reshape
    N = xr.shape[0]
    itemsize = jnp.dtype(x.dtype).itemsize

    tb, rb, vmem_cap = _pick_blocks(N, CHW, HW, itemsize)
    n_chunks = tb // rb
    assert tb % rb == 0

    # 128-lane-aligned zero halo on each side of the flattened H*W spatial axis
    halo = PAD * W + PAD                 # max |flat shift| of any tap
    lp = _round_up(halo, 128)
    tpw = HW + 2 * lp

    w_flat = weight.reshape(-1).astype(jnp.float32)  # (2*K*K,), layout [in_ch, kh, kw]

    def kernel(x_ref, w_ref, o_ref, tpad_ref):
        """x_ref/o_ref: (tb, C*H*W) VMEM; w_ref: (2*K*K,) SMEM;
        tpad_ref: (2, rb, tpw) VMEM scratch holding the zero-haloed avg/max maps
        of the current rb-row chunk."""
        f32 = jnp.float32

        # ---- zero halos once per grid step (chunk-invariant).  Re-written every
        # step -- no cross-step scratch state -> the batch axis can stay "parallel"
        # even when it is split across TensorCores.
        zh = jnp.zeros((rb, lp), f32)
        for c in range(2):
            tpad_ref[c, :, 0:lp] = zh
            tpad_ref[c, :, lp + HW:tpw] = zh

        # ---- per-column wrap-validity masks (depend only on the horizontal tap
        # offset kj; hoisted out of both the chunk loop and the vertical-tap sum).
        q = jax.lax.broadcasted_iota(jnp.int32, (rb, HW), 1)
        if W & (W - 1) == 0:
            col = jnp.bitwise_and(q, W - 1)
        else:
            col = jax.lax.rem(q, W)
        masks = {}
        for kj in range(KSIZE):
            dj = kj - PAD
            if dj == 0:
                continue
            masks[kj] = jnp.logical_and(col + dj >= 0, col + dj < W).astype(f32)

        def process_chunk(r0):
            rows = pl.ds(r0, rb)

            # -- channel mean & max (lane-aligned slices of the flattened C*HW axis)
            x0 = x_ref[rows, pl.ds(0, HW)].astype(f32)
            s = x0
            m = x0
            for c in range(1, C):
                xc = x_ref[rows, pl.ds(c * HW, HW)].astype(f32)
                s = s + xc
                m = jnp.maximum(m, xc)
            # TODO(synk): for very large C (>=64) switch this and the apply loop to a
            # rolled lax.fori_loop to bound program size; static unroll is right at C=4.

            # -- stage the haloed avg/max maps for shifted reads
            tpad_ref[0, :, lp:lp + HW] = s * (1.0 / C)
            tpad_ref[1, :, lp:lp + HW] = m

            # -- 7x7 "same" conv as shifted MACs on the flattened spatial axis.
            # Column mask is factored out of the vertical (ki) sum; two independent
            # accumulators break the serial add chain.
            acc0 = jnp.zeros((rb, HW), f32)
            acc1 = jnp.zeros((rb, HW), f32)
            t = 0
            for c in range(2):
                for kj in range(KSIZE):
                    dj = kj - PAD
                    p = None
                    for ki in range(KSIZE):
                        di = ki - PAD
                        off = lp + di * W + dj
                        wgt = w_ref[c * KSIZE * KSIZE + ki * KSIZE + kj]  # SMEM scalar
                        term = tpad_ref[c, :, off:off + HW] * wgt         # shifted (rb, HW) read
                        p = term if p is None else p + term
                    contrib = p if dj == 0 else masks[kj] * p
                    if t % 2 == 0:
                        acc0 = acc0 + contrib
                    else:
                        acc1 = acc1 + contrib
                    t += 1
            attn = jax.nn.sigmoid(acc0 + acc1)  # (rb, HW)

            # -- apply attention per channel (lane-aligned loads/stores, native dtype out)
            for c in range(C):
                xc = x_ref[rows, pl.ds(c * HW, HW)].astype(f32)
                o_ref[rows, pl.ds(c * HW, HW)] = (xc * attn).astype(o_ref.dtype)

        if n_chunks == 1:
            process_chunk(0)
        else:
            @pl.loop(0, n_chunks)
            def _(ci):
                process_chunk(pl.multiple_of(ci * rb, rb))

    # VMEM budget: in+out blocks (double-buffered) + scratch + margin.
    needed = 2 * 2 * tb * CHW * itemsize + 2 * rb * tpw * 4
    vmem_limit = int(min(max(needed + (8 << 20), 32 << 20), int(vmem_cap * 0.9)))

    y = pl.pallas_call(
        kernel,
        out_shape=jax.ShapeDtypeStruct((N, CHW), x.dtype),
        grid_spec=pltpu.PrefetchScalarGridSpec(
            num_scalar_prefetch=0,
            grid=(pl.cdiv(N, tb),),
            in_specs=[
                pl.BlockSpec((tb, CHW), lambda n: (n, 0)),
                pl.BlockSpec(memory_space=pltpu.MemorySpace.SMEM),
            ],
            out_specs=pl.BlockSpec((tb, CHW), lambda n: (n, 0)),
            scratch_shapes=[pltpu.VMEM((2, rb, tpw), jnp.float32)],
        ),
        compiler_params=pltpu.CompilerParams(
            dimension_semantics=("parallel",),
            vmem_limit_bytes=vmem_limit,
        ),
    )(xr, w_flat)

    # PyTorch: y.view(x.size(0), x.size(1), -1, x.size(-2), x.size(-1))
    return y.reshape(x.shape[0], x.shape[1], -1, H, W)


def spatial_attention_reference(x, weight):
    """Pure-JAX reference (mirrors the PyTorch forward)."""
    C, H, W = x.shape[-3], x.shape[-2], x.shape[-1]
    xr = x.reshape(-1, C, H, W)
    avg = jnp.mean(xr, axis=1, keepdims=True)
    mx = jnp.max(xr, axis=1, keepdims=True)
    t = jnp.concatenate([avg, mx], axis=1)
    conv = jax.lax.conv_general_dilated(
        t, weight, window_strides=(1, 1), padding=[(PAD, PAD), (PAD, PAD)],
        dimension_numbers=("NCHW", "OIHW", "NCHW"))
    attn = jax.nn.sigmoid(conv)
    y = attn * xr
    return y.reshape(x.shape[0], x.shape[1], -1, H, W)


if __name__ == "__main__":
    key = jax.random.PRNGKey(0)
    kx, kw = jax.random.split(key)

    # Input consistent with the module: NCHW, batch=2, channels=4, spatial=16
    x = jax.random.normal(kx, (2, 4, 16, 16), dtype=jnp.float32)

    # Deterministic conv weight init (PyTorch default: uniform(-1/sqrt(fan_in), 1/sqrt(fan_in)))
    fan_in = 2 * KSIZE * KSIZE
    bound = 1.0 / (fan_in ** 0.5)
    weight = jax.random.uniform(kw, (1, 2, KSIZE, KSIZE), jnp.float32, -bound, bound)

    y = spatial_attention(x, weight)
    y = jax.block_until_ready(y)

    assert y.shape == (2, 4, 1, 16, 16), y.shape
    y_ref = spatial_attention_reference(x, weight)
    np.testing.assert_allclose(np.asarray(y), np.asarray(y_ref), atol=1e-5, rtol=1e-5)

    print("KERNEL_OK")
</pallas_src>

<mosaic_0001>
module attributes {stable_mosaic.version = 11 : i64} {
  func.func @kernel(%arg0: i32, %arg1: memref<2x1024xf32, #tpu.memory_space<vmem>>, %arg2: memref<98xf32, #tpu.memory_space<smem>>, %arg3: memref<2x1024xf32, #tpu.memory_space<vmem>>, %arg4: memref<2x2x512xf32, #tpu.memory_space<vmem>>) attributes {dimension_semantics = [#tpu.dimension_semantics<parallel>], iteration_bounds = array<i64: 1>, scalar_prefetch = 0 : i64, scratch_operands = 1 : i64, tpu.core_type = #tpu.core_type<tc>, window_params = [{transform_indices = @transform_0, window_bounds = array<i64: 2, 1024>}, {transform_indices = @transform_1, window_bounds = array<i64: 98>}, {transform_indices = @transform_2, window_bounds = array<i64: 2, 1024>}]} {
    %cst = arith.constant 0.000000e+00 : f32
    %0 = vector.broadcast %cst : f32 to vector<2x128xf32>
    %c0 = arith.constant 0 : index
    %c0_0 = arith.constant 0 : index
    %c0_1 = arith.constant 0 : index
    %1 = vector.load %arg4[%c0, %c0_0, %c0_1] : memref<2x2x512xf32, #tpu.memory_space<vmem>>, vector<1x2x128xf32>
    %2 = vector.shape_cast %1 : vector<1x2x128xf32> to vector<2x128xf32>
    %3 = vector.shape_cast %0 : vector<2x128xf32> to vector<1x2x128xf32>
    tpu.vector_store %arg4[%c0, %c0_0, %c0_1], %3 {strides = array<i32>} : memref<2x2x512xf32, #tpu.memory_space<vmem>>, vector<1x2x128xf32>,
    %c0_2 = arith.constant 0 : index
    %c0_3 = arith.constant 0 : index
    %c384 = arith.constant 384 : index
    %4 = vector.load %arg4[%c0_2, %c0_3, %c384] : memref<2x2x512xf32, #tpu.memory_space<vmem>>, vector<1x2x128xf32>
    %5 = vector.shape_cast %4 : vector<1x2x128xf32> to vector<2x128xf32>
    %6 = vector.shape_cast %0 : vector<2x128xf32> to vector<1x2x128xf32>
    tpu.vector_store %arg4[%c0_2, %c0_3, %c384], %6 {strides = array<i32>} : memref<2x2x512xf32, #tpu.memory_space<vmem>>, vector<1x2x128xf32>,
    %c1 = arith.constant 1 : index
    %c0_4 = arith.constant 0 : index
    %c0_5 = arith.constant 0 : index
    %7 = vector.load %arg4[%c1, %c0_4, %c0_5] : memref<2x2x512xf32, #tpu.memory_space<vmem>>, vector<1x2x128xf32>
    %8 = vector.shape_cast %7 : vector<1x2x128xf32> to vector<2x128xf32>
    %9 = vector.shape_cast %0 : vector<2x128xf32> to vector<1x2x128xf32>
    tpu.vector_store %arg4[%c1, %c0_4, %c0_5], %9 {strides = array<i32>} : memref<2x2x512xf32, #tpu.memory_space<vmem>>, vector<1x2x128xf32>,
    %c1_6 = arith.constant 1 : index
    %c0_7 = arith.constant 0 : index
    %c384_8 = arith.constant 384 : index
    %10 = vector.load %arg4[%c1_6, %c0_7, %c384_8] : memref<2x2x512xf32, #tpu.memory_space<vmem>>, vector<1x2x128xf32>
    %11 = vector.shape_cast %10 : vector<1x2x128xf32> to vector<2x128xf32>
    %12 = vector.shape_cast %0 : vector<2x128xf32> to vector<1x2x128xf32>
    tpu.vector_store %arg4[%c1_6, %c0_7, %c384_8], %12 {strides = array<i32>} : memref<2x2x512xf32, #tpu.memory_space<vmem>>, vector<1x2x128xf32>,
    %13 = tpu.iota {dimensions = array<i32: 1>} : vector<2x256xi32>
    %c15_i32 = arith.constant 15 : i32
    %14 = vector.broadcast %c15_i32 : i32 to vector<2x256xi32>
    %15 = arith.andi %13, %14 : vector<2x256xi32>
    %c-3_i32 = arith.constant -3 : i32
    %16 = vector.broadcast %c-3_i32 : i32 to vector<2x256xi32>
    %17 = arith.addi %15, %16 : vector<2x256xi32>
    %c0_i32 = arith.constant 0 : i32
    %18 = vector.broadcast %c0_i32 : i32 to vector<2x256xi32>
    %19 = arith.cmpi sge, %17, %18 : vector<2x256xi32>
    %c-3_i32_9 = arith.constant -3 : i32
    %20 = vector.broadcast %c-3_i32_9 : i32 to vector<2x256xi32>
    %21 = arith.addi %15, %20 : vector<2x256xi32>
    %c16_i32 = arith.constant 16 : i32
    %22 = vector.broadcast %c16_i32 : i32 to vector<2x256xi32>
    %23 = arith.cmpi slt, %21, %22 : vector<2x256xi32>
    %24 = arith.andi %19, %23 : vector<2x256xi1>
    %25 = arith.extui %24 : vector<2x256xi1> to vector<2x256xi32>
    %26 = arith.sitofp %25 : vector<2x256xi32> to vector<2x256xf32>
    %c-2_i32 = arith.constant -2 : i32
    %27 = vector.broadcast %c-2_i32 : i32 to vector<2x256xi32>
    %28 = arith.addi %15, %27 : vector<2x256xi32>
    %c0_i32_10 = arith.constant 0 : i32
    %29 = vector.broadcast %c0_i32_10 : i32 to vector<2x256xi32>
    %30 = arith.cmpi sge, %28, %29 : vector<2x256xi32>
    %c-2_i32_11 = arith.constant -2 : i32
    %31 = vector.broadcast %c-2_i32_11 : i32 to vector<2x256xi32>
    %32 = arith.addi %15, %31 : vector<2x256xi32>
    %c16_i32_12 = arith.constant 16 : i32
    %33 = vector.broadcast %c16_i32_12 : i32 to vector<2x256xi32>
    %34 = arith.cmpi slt, %32, %33 : vector<2x256xi32>
    %35 = arith.andi %30, %34 : vector<2x256xi1>
    %36 = arith.extui %35 : vector<2x256xi1> to vector<2x256xi32>
    %37 = arith.sitofp %36 : vector<2x256xi32> to vector<2x256xf32>
    %c-1_i32 = arith.constant -1 : i32
    %38 = vector.broadcast %c-1_i32 : i32 to vector<2x256xi32>
    %39 = arith.addi %15, %38 : vector<2x256xi32>
    %c0_i32_13 = arith.constant 0 : i32
    %40 = vector.broadcast %c0_i32_13 : i32 to vector<2x256xi32>
    %41 = arith.cmpi sge, %39, %40 : vector<2x256xi32>
    %c-1_i32_14 = arith.constant -1 : i32
    %42 = vector.broadcast %c-1_i32_14 : i32 to vector<2x256xi32>
    %43 = arith.addi %15, %42 : vector<2x256xi32>
    %c16_i32_15 = arith.constant 16 : i32
    %44 = vector.broadcast %c16_i32_15 : i32 to vector<2x256xi32>
    %45 = arith.cmpi slt, %43, %44 : vector<2x256xi32>
    %46 = arith.andi %41, %45 : vector<2x256xi1>
    %47 = arith.extui %46 : vector<2x256xi1> to vector<2x256xi32>
    %48 = arith.sitofp %47 : vector<2x256xi32> to vector<2x256xf32>
    %c1_i32 = arith.constant 1 : i32
    %49 = vector.broadcast %c1_i32 : i32 to vector<2x256xi32>
    %50 = arith.addi %15, %49 : vector<2x256xi32>
    %c0_i32_16 = arith.constant 0 : i32
    %51 = vector.broadcast %c0_i32_16 : i32 to vector<2x256xi32>
    %52 = arith.cmpi sge, %50, %51 : vector<2x256xi32>
    %c1_i32_17 = arith.constant 1 : i32
    %53 = vector.broadcast %c1_i32_17 : i32 to vector<2x256xi32>
    %54 = arith.addi %15, %53 : vector<2x256xi32>
    %c16_i32_18 = arith.constant 16 : i32
    %55 = vector.broadcast %c16_i32_18 : i32 to vector<2x256xi32>
    %56 = arith.cmpi slt, %54, %55 : vector<2x256xi32>
    %57 = arith.andi %52, %56 : vector<2x256xi1>
    %58 = arith.extui %57 : vector<2x256xi1> to vector<2x256xi32>
    %59 = arith.sitofp %58 : vector<2x256xi32> to vector<2x256xf32>
    %c2_i32 = arith.constant 2 : i32
    %60 = vector.broadcast %c2_i32 : i32 to vector<2x256xi32>
    %61 = arith.addi %15, %60 : vector<2x256xi32>
    %c0_i32_19 = arith.constant 0 : i32
    %62 = vector.broadcast %c0_i32_19 : i32 to vector<2x256xi32>
    %63 = arith.cmpi sge, %61, %62 : vector<2x256xi32>
    %c2_i32_20 = arith.constant 2 : i32
    %64 = vector.broadcast %c2_i32_20 : i32 to vector<2x256xi32>
    %65 = arith.addi %15, %64 : vector<2x256xi32>
    %c16_i32_21 = arith.constant 16 : i32
    %66 = vector.broadcast %c16_i32_21 : i32 to vector<2x256xi32>
    %67 = arith.cmpi slt, %65, %66 : vector<2x256xi32>
    %68 = arith.andi %63, %67 : vector<2x256xi1>
    %69 = arith.extui %68 : vector<2x256xi1> to vector<2x256xi32>
    %70 = arith.sitofp %69 : vector<2x256xi32> to vector<2x256xf32>
    %c3_i32 = arith.constant 3 : i32
    %71 = vector.broadcast %c3_i32 : i32 to vector<2x256xi32>
    %72 = arith.addi %15, %71 : vector<2x256xi32>
    %c0_i32_22 = arith.constant 0 : i32
    %73 = vector.broadcast %c0_i32_22 : i32 to vector<2x256xi32>
    %74 = arith.cmpi sge, %72, %73 : vector<2x256xi32>
    %c3_i32_23 = arith.constant 3 : i32
    %75 = vector.broadcast %c3_i32_23 : i32 to vector<2x256xi32>
    %76 = arith.addi %15, %75 : vector<2x256xi32>
    %c16_i32_24 = arith.constant 16 : i32
    %77 = vector.broadcast %c16_i32_24 : i32 to vector<2x256xi32>
    %78 = arith.cmpi slt, %76, %77 : vector<2x256xi32>
    %79 = arith.andi %74, %78 : vector<2x256xi1>
    %80 = arith.extui %79 : vector<2x256xi1> to vector<2x256xi32>
    %81 = arith.sitofp %80 : vector<2x256xi32> to vector<2x256xf32>
    %c0_25 = arith.constant 0 : index
    %c0_26 = arith.constant 0 : index
    %82 = vector.load %arg1[%c0_25, %c0_26] : memref<2x1024xf32, #tpu.memory_space<vmem>>, vector<2x256xf32>
    %c0_27 = arith.constant 0 : index
    %c256 = arith.constant 256 : index
    %83 = vector.load %arg1[%c0_27, %c256] : memref<2x1024xf32, #tpu.memory_space<vmem>>, vector<2x256xf32>
    %84 = arith.addf %82, %83 : vector<2x256xf32>
    %85 = arith.maximumf %82, %83 : vector<2x256xf32>
    %c0_28 = arith.constant 0 : index
    %c512 = arith.constant 512 : index
    %86 = vector.load %arg1[%c0_28, %c512] : memref<2x1024xf32, #tpu.memory_space<vmem>>, vector<2x256xf32>
    %87 = arith.addf %84, %86 : vector<2x256xf32>
    %88 = arith.maximumf %85, %86 : vector<2x256xf32>
    %c0_29 = arith.constant 0 : index
    %c768 = arith.constant 768 : index
    %89 = vector.load %arg1[%c0_29, %c768] : memref<2x1024xf32, #tpu.memory_space<vmem>>, vector<2x256xf32>
    %90 = arith.addf %87, %89 : vector<2x256xf32>
    %91 = arith.maximumf %88, %89 : vector<2x256xf32>
    %cst_30 = arith.constant 2.500000e-01 : f32
    %92 = vector.broadcast %cst_30 : f32 to vector<2x256xf32>
    %93 = arith.mulf %90, %92 : vector<2x256xf32>
    %c0_31 = arith.constant 0 : index
    %c0_32 = arith.constant 0 : index
    %c128 = arith.constant 128 : index
    %94 = vector.load %arg4[%c0_31, %c0_32, %c128] : memref<2x2x512xf32, #tpu.memory_space<vmem>>, vector<1x2x256xf32>
    %95 = vector.shape_cast %94 : vector<1x2x256xf32> to vector<2x256xf32>
    %96 = vector.shape_cast %93 : vector<2x256xf32> to vector<1x2x256xf32>
    tpu.vector_store %arg4[%c0_31, %c0_32, %c128], %96 {strides = array<i32>} : memref<2x2x512xf32, #tpu.memory_space<vmem>>, vector<1x2x256xf32>,
    %c1_33 = arith.constant 1 : index
    %c0_34 = arith.constant 0 : index
    %c128_35 = arith.constant 128 : index
    %97 = vector.load %arg4[%c1_33, %c0_34, %c128_35] : memref<2x2x512xf32, #tpu.memory_space<vmem>>, vector<1x2x256xf32>
    %98 = vector.shape_cast %97 : vector<1x2x256xf32> to vector<2x256xf32>
    %99 = vector.shape_cast %91 : vector<2x256xf32> to vector<1x2x256xf32>
    tpu.vector_store %arg4[%c1_33, %c0_34, %c128_35], %99 {strides = array<i32>} : memref<2x2x512xf32, #tpu.memory_space<vmem>>, vector<1x2x256xf32>,
    %cst_36 = arith.constant 0.000000e+00 : f32
    %100 = vector.broadcast %cst_36 : f32 to vector<2x256xf32>
    %cst_37 = arith.constant 0.000000e+00 : f32
    %101 = vector.broadcast %cst_37 : f32 to vector<2x256xf32>
    %c0_38 = arith.constant 0 : index
    %102 = memref.load %arg2[%c0_38] : memref<98xf32, #tpu.memory_space<smem>>
    %c0_39 = arith.constant 0 : index
    %c0_40 = arith.constant 0 : index
    %c77 = arith.constant 77 : index
    %103 = vector.load %arg4[%c0_39, %c0_40, %c77] : memref<2x2x512xf32, #tpu.memory_space<vmem>>, vector<1x2x256xf32>
    %104 = vector.shape_cast %103 : vector<1x2x256xf32> to vector<2x256xf32>
    %105 = vector.broadcast %102 : f32 to vector<2x256xf32>
    %106 = arith.mulf %104, %105 : vector<2x256xf32>
    %c7 = arith.constant 7 : index
    %107 = memref.load %arg2[%c7] : memref<98xf32, #tpu.memory_space<smem>>
    %c0_41 = arith.constant 0 : index
    %c0_42 = arith.constant 0 : index
    %c93 = arith.constant 93 : index
    %108 = vector.load %arg4[%c0_41, %c0_42, %c93] : memref<2x2x512xf32, #tpu.memory_space<vmem>>, vector<1x2x256xf32>
    %109 = vector.shape_cast %108 : vector<1x2x256xf32> to vector<2x256xf32>
    %110 = vector.broadcast %107 : f32 to vector<2x256xf32>
    %111 = arith.mulf %109, %110 : vector<2x256xf32>
    %112 = arith.addf %106, %111 : vector<2x256xf32>
    %c14 = arith.constant 14 : index
    %113 = memref.load %arg2[%c14] : memref<98xf32, #tpu.memory_space<smem>>
    %c0_43 = arith.constant 0 : index
    %c0_44 = arith.constant 0 : index
    %c109 = arith.constant 109 : index
    %114 = vector.load %arg4[%c0_43, %c0_44, %c109] : memref<2x2x512xf32, #tpu.memory_space<vmem>>, vector<1x2x256xf32>
    %115 = vector.shape_cast %114 : vector<1x2x256xf32> to vector<2x256xf32>
    %116 = vector.broadcast %113 : f32 to vector<2x256xf32>
    %117 = arith.mulf %115, %116 : vector<2x256xf32>
    %118 = arith.addf %112, %117 : vector<2x256xf32>
    %c21 = arith.constant 21 : index
    %119 = memref.load %arg2[%c21] : memref<98xf32, #tpu.memory_space<smem>>
    %c0_45 = arith.constant 0 : index
    %c0_46 = arith.constant 0 : index
    %c125 = arith.constant 125 : index
    %120 = vector.load %arg4[%c0_45, %c0_46, %c125] : memref<2x2x512xf32, #tpu.memory_space<vmem>>, vector<1x2x256xf32>
    %121 = vector.shape_cast %120 : vector<1x2x256xf32> to vector<2x256xf32>
    %122 = vector.broadcast %119 : f32 to vector<2x256xf32>
    %123 = arith.mulf %121, %122 : vector<2x256xf32>
    %124 = arith.addf %118, %123 : vector<2x256xf32>
    %c28 = arith.constant 28 : index
    %125 = memref.load %arg2[%c28] : memref<98xf32, #tpu.memory_space<smem>>
    %c0_47 = arith.constant 0 : index
    %c0_48 = arith.constant 0 : index
    %c141 = arith.constant 141 : index
    %126 = vector.load %arg4[%c0_47, %c0_48, %c141] : memref<2x2x512xf32, #tpu.memory_space<vmem>>, vector<1x2x256xf32>
    %127 = vector.shape_cast %126 : vector<1x2x256xf32> to vector<2x256xf32>
    %128 = vector.broadcast %125 : f32 to vector<2x256xf32>
    %129 = arith.mulf %127, %128 : vector<2x256xf32>
    %130 = arith.addf %124, %129 : vector<2x256xf32>
    %c35 = arith.constant 35 : index
    %131 = memref.load %arg2[%c35] : memref<98xf32, #tpu.memory_space<smem>>
    %c0_49 = arith.constant 0 : index
    %c0_50 = arith.constant 0 : index
    %c157 = arith.constant 157 : index
    %132 = vector.load %arg4[%c0_49, %c0_50, %c157] : memref<2x2x512xf32, #tpu.memory_space<vmem>>, vector<1x2x256xf32>
    %133 = vector.shape_cast %132 : vector<1x2x256xf32> to vector<2x256xf32>
    %134 = vector.broadcast %131 : f32 to vector<2x256xf32>
    %135 = arith.mulf %133, %134 : vector<2x256xf32>
    %136 = arith.addf %130, %135 : vector<2x256xf32>
    %c42 = arith.constant 42 : index
    %137 = memref.load %arg2[%c42] : memref<98xf32, #tpu.memory_space<smem>>
    %c0_51 = arith.constant 0 : index
    %c0_52 = arith.constant 0 : index
    %c173 = arith.constant 173 : index
    %138 = vector.load %arg4[%c0_51, %c0_52, %c173] : memref<2x2x512xf32, #tpu.memory_space<vmem>>, vector<1x2x256xf32>
    %139 = vector.shape_cast %138 : vector<1x2x256xf32> to vector<2x256xf32>
    %140 = vector.broadcast %137 : f32 to vector<2x256xf32>
    %141 = arith.mulf %139, %140 : vector<2x256xf32>
    %142 = arith.addf %136, %141 : vector<2x256xf32>
    %143 = arith.mulf %26, %142 : vector<2x256xf32>
    %144 = arith.addf %100, %143 : vector<2x256xf32>
    %c1_53 = arith.constant 1 : index
    %145 = memref.load %arg2[%c1_53] : memref<98xf32, #tpu.memory_space<smem>>
    %c0_54 = arith.constant 0 : index
    %c0_55 = arith.constant 0 : index
    %c78 = arith.constant 78 : index
    %146 = vector.load %arg4[%c0_54, %c0_55, %c78] : memref<2x2x512xf32, #tpu.memory_space<vmem>>, vector<1x2x256xf32>
    %147 = vector.shape_cast %146 : vector<1x2x256xf32> to vector<2x256xf32>
    %148 = vector.broadcast %145 : f32 to vector<2x256xf32>
    %149 = arith.mulf %147, %148 : vector<2x256xf32>
    %c8 = arith.constant 8 : index
    %150 = memref.load %arg2[%c8] : memref<98xf32, #tpu.memory_space<smem>>
    %c0_56 = arith.constant 0 : index
    %c0_57 = arith.constant 0 : index
    %c94 = arith.constant 94 : index
    %151 = vector.load %arg4[%c0_56, %c0_57, %c94] : memref<2x2x512xf32, #tpu.memory_space<vmem>>, vector<1x2x256xf32>
    %152 = vector.shape_cast %151 : vector<1x2x256xf32> to vector<2x256xf32>
    %153 = vector.broadcast %150 : f32 to vector<2x256xf32>
    %154 = arith.mulf %152, %153 : vector<2x256xf32>
    %155 = arith.addf %149, %154 : vector<2x256xf32>
    %c15 = arith.constant 15 : index
    %156 = memref.load %arg2[%c15] : memref<98xf32, #tpu.memory_space<smem>>
    %c0_58 = arith.constant 0 : index
    %c0_59 = arith.constant 0 : index
    %c110 = arith.constant 110 : index
    %157 = vector.load %arg4[%c0_58, %c0_59, %c110] : memref<2x2x512xf32, #tpu.memory_space<vmem>>, vector<1x2x256xf32>
    %158 = vector.shape_cast %157 : vector<1x2x256xf32> to vector<2x256xf32>
    %159 = vector.broadcast %156 : f32 to vector<2x256xf32>
    %160 = arith.mulf %158, %159 : vector<2x256xf32>
    %161 = arith.addf %155, %160 : vector<2x256xf32>
    %c22 = arith.constant 22 : index
    %162 = memref.load %arg2[%c22] : memref<98xf32, #tpu.memory_space<smem>>
    %c0_60 = arith.constant 0 : index
    %c0_61 = arith.constant 0 : index
    %c126 = arith.constant 126 : index
    %163 = vector.load %arg4[%c0_60, %c0_61, %c126] : memref<2x2x512xf32, #tpu.memory_space<vmem>>, vector<1x2x256xf32>
    %164 = vector.shape_cast %163 : vector<1x2x256xf32> to vector<2x256xf32>
    %165 = vector.broadcast %162 : f32 to vector<2x256xf32>
    %166 = arith.mulf %164, %165 : vector<2x256xf32>
    %167 = arith.addf %161, %166 : vector<2x256xf32>
    %c29 = arith.constant 29 : index
    %168 = memref.load %arg2[%c29] : memref<98xf32, #tpu.memory_space<smem>>
    %c0_62 = arith.constant 0 : index
    %c0_63 = arith.constant 0 : index
    %c142 = arith.constant 142 : index
    %169 = vector.load %arg4[%c0_62, %c0_63, %c142] : memref<2x2x512xf32, #tpu.memory_space<vmem>>, vector<1x2x256xf32>
    %170 = vector.shape_cast %169 : vector<1x2x256xf32> to vector<2x256xf32>
    %171 = vector.broadcast %168 : f32 to vector<2x256xf32>
    %172 = arith.mulf %170, %171 : vector<2x256xf32>
    %173 = arith.addf %167, %172 : vector<2x256xf32>
    %c36 = arith.constant 36 : index
    %174 = memref.load %arg2[%c36] : memref<98xf32, #tpu.memory_space<smem>>
    %c0_64 = arith.constant 0 : index
    %c0_65 = arith.constant 0 : index
    %c158 = arith.constant 158 : index
    %175 = vector.load %arg4[%c0_64, %c0_65, %c158] : memref<2x2x512xf32, #tpu.memory_space<vmem>>, vector<1x2x256xf32>
    %176 = vector.shape_cast %175 : vector<1x2x256xf32> to vector<2x256xf32>
    %177 = vector.broadcast %174 : f32 to vector<2x256xf32>
    %178 = arith.mulf %176, %177 : vector<2x256xf32>
    %179 = arith.addf %173, %178 : vector<2x256xf32>
    %c43 = arith.constant 43 : index
    %180 = memref.load %arg2[%c43] : memref<98xf32, #tpu.memory_space<smem>>
    %c0_66 = arith.constant 0 : index
    %c0_67 = arith.constant 0 : index
    %c174 = arith.constant 174 : index
    %181 = vector.load %arg4[%c0_66, %c0_67, %c174] : memref<2x2x512xf32, #tpu.memory_space<vmem>>, vector<1x2x256xf32>
    %182 = vector.shape_cast %181 : vector<1x2x256xf32> to vector<2x256xf32>
    %183 = vector.broadcast %180 : f32 to vector<2x256xf32>
    %184 = arith.mulf %182, %183 : vector<2x256xf32>
    %185 = arith.addf %179, %184 : vector<2x256xf32>
    %186 = arith.mulf %37, %185 : vector<2x256xf32>
    %187 = arith.addf %101, %186 : vector<2x256xf32>
    %c2 = arith.constant 2 : index
    %188 = memref.load %arg2[%c2] : memref<98xf32, #tpu.memory_space<smem>>
    %c0_68 = arith.constant 0 : index
    %c0_69 = arith.constant 0 : index
    %c79 = arith.constant 79 : index
    %189 = vector.load %arg4[%c0_68, %c0_69, %c79] : memref<2x2x512xf32, #tpu.memory_space<vmem>>, vector<1x2x256xf32>
    %190 = vector.shape_cast %189 : vector<1x2x256xf32> to vector<2x256xf32>
    %191 = vector.broadcast %188 : f32 to vector<2x256xf32>
    %192 = arith.mulf %190, %191 : vector<2x256xf32>
    %c9 = arith.constant 9 : index
    %193 = memref.load %arg2[%c9] : memref<98xf32, #tpu.memory_space<smem>>
    %c0_70 = arith.constant 0 : index
    %c0_71 = arith.constant 0 : index
    %c95 = arith.constant 95 : index
    %194 = vector.load %arg4[%c0_70, %c0_71, %c95] : memref<2x2x512xf32, #tpu.memory_space<vmem>>, vector<1x2x256xf32>
    %195 = vector.shape_cast %194 : vector<1x2x256xf32> to vector<2x256xf32>
    %196 = vector.broadcast %193 : f32 to vector<2x256xf32>
    %197 = arith.mulf %195, %196 : vector<2x256xf32>
    %198 = arith.addf %192, %197 : vector<2x256xf32>
    %c16 = arith.constant 16 : index
    %199 = memref.load %arg2[%c16] : memref<98xf32, #tpu.memory_space<smem>>
    %c0_72 = arith.constant 0 : index
    %c0_73 = arith.constant 0 : index
    %c111 = arith.constant 111 : index
    %200 = vector.load %arg4[%c0_72, %c0_73, %c111] : memref<2x2x512xf32, #tpu.memory_space<vmem>>, vector<1x2x256xf32>
    %201 = vector.shape_cast %200 : vector<1x2x256xf32> to vector<2x256xf32>
    %202 = vector.broadcast %199 : f32 to vector<2x256xf32>
    %203 = arith.mulf %201, %202 : vector<2x256xf32>
    %204 = arith.addf %198, %203 : vector<2x256xf32>
    %c23 = arith.constant 23 : index
    %205 = memref.load %arg2[%c23] : memref<98xf32, #tpu.memory_space<smem>>
    %c0_74 = arith.constant 0 : index
    %c0_75 = arith.constant 0 : index
    %c127 = arith.constant 127 : index
    %206 = vector.load %arg4[%c0_74, %c0_75, %c127] : memref<2x2x512xf32, #tpu.memory_space<vmem>>, vector<1x2x256xf32>
    %207 = vector.shape_cast %206 : vector<1x2x256xf32> to vector<2x256xf32>
    %208 = vector.broadcast %205 : f32 to vector<2x256xf32>
    %209 = arith.mulf %207, %208 : vector<2x256xf32>
    %210 = arith.addf %204, %209 : vector<2x256xf32>
    %c30 = arith.constant 30 : index
    %211 = memref.load %arg2[%c30] : memref<98xf32, #tpu.memory_space<smem>>
    %c0_76 = arith.constant 0 : index
    %c0_77 = arith.constant 0 : index
    %c143 = arith.constant 143 : index
    %212 = vector.load %arg4[%c0_76, %c0_77, %c143] : memref<2x2x512xf32, #tpu.memory_space<vmem>>, vector<1x2x256xf32>
    %213 = vector.shape_cast %212 : vector<1x2x256xf32> to vector<2x256xf32>
    %214 = vector.broadcast %211 : f32 to vector<2x256xf32>
    %215 = arith.mulf %213, %214 : vector<2x256xf32>
    %216 = arith.addf %210, %215 : vector<2x256xf32>
    %c37 = arith.constant 37 : index
    %217 = memref.load %arg2[%c37] : memref<98xf32, #tpu.memory_space<smem>>
    %c0_78 = arith.constant 0 : index
    %c0_79 = arith.constant 0 : index
    %c159 = arith.constant 159 : index
    %218 = vector.load %arg4[%c0_78, %c0_79, %c159] : memref<2x2x512xf32, #tpu.memory_space<vmem>>, vector<1x2x256xf32>
    %219 = vector.shape_cast %218 : vector<1x2x256xf32> to vector<2x256xf32>
    %220 = vector.broadcast %217 : f32 to vector<2x256xf32>
    %221 = arith.mulf %219, %220 : vector<2x256xf32>
    %222 = arith.addf %216, %221 : vector<2x256xf32>
    %c44 = arith.constant 44 : index
    %223 = memref.load %arg2[%c44] : memref<98xf32, #tpu.memory_space<smem>>
    %c0_80 = arith.constant 0 : index
    %c0_81 = arith.constant 0 : index
    %c175 = arith.constant 175 : index
    %224 = vector.load %arg4[%c0_80, %c0_81, %c175] : memref<2x2x512xf32, #tpu.memory_space<vmem>>, vector<1x2x256xf32>
    %225 = vector.shape_cast %224 : vector<1x2x256xf32> to vector<2x256xf32>
    %226 = vector.broadcast %223 : f32 to vector<2x256xf32>
    %227 = arith.mulf %225, %226 : vector<2x256xf32>
    %228 = arith.addf %222, %227 : vector<2x256xf32>
    %229 = arith.mulf %48, %228 : vector<2x256xf32>
    %230 = arith.addf %144, %229 : vector<2x256xf32>
    %c3 = arith.constant 3 : index
    %231 = memref.load %arg2[%c3] : memref<98xf32, #tpu.memory_space<smem>>
    %c0_82 = arith.constant 0 : index
    %c0_83 = arith.constant 0 : index
    %c80 = arith.constant 80 : index
    %232 = vector.load %arg4[%c0_82, %c0_83, %c80] : memref<2x2x512xf32, #tpu.memory_space<vmem>>, vector<1x2x256xf32>
    %233 = vector.shape_cast %232 : vector<1x2x256xf32> to vector<2x256xf32>
    %234 = vector.broadcast %231 : f32 to vector<2x256xf32>
    %235 = arith.mulf %233, %234 : vector<2x256xf32>
    %c10 = arith.constant 10 : index
    %236 = memref.load %arg2[%c10] : memref<98xf32, #tpu.memory_space<smem>>
    %c0_84 = arith.constant 0 : index
    %c0_85 = arith.constant 0 : index
    %c96 = arith.constant 96 : index
    %237 = vector.load %arg4[%c0_84, %c0_85, %c96] : memref<2x2x512xf32, #tpu.memory_space<vmem>>, vector<1x2x256xf32>
    %238 = vector.shape_cast %237 : vector<1x2x256xf32> to vector<2x256xf32>
    %239 = vector.broadcast %236 : f32 to vector<2x256xf32>
    %240 = arith.mulf %238, %239 : vector<2x256xf32>
    %241 = arith.addf %235, %240 : vector<2x256xf32>
    %c17 = arith.constant 17 : index
    %242 = memref.load %arg2[%c17] : memref<98xf32, #tpu.memory_space<smem>>
    %c0_86 = arith.constant 0 : index
    %c0_87 = arith.constant 0 : index
    %c112 = arith.constant 112 : index
    %243 = vector.load %arg4[%c0_86, %c0_87, %c112] : memref<2x2x512xf32, #tpu.memory_space<vmem>>, vector<1x2x256xf32>
    %244 = vector.shape_cast %243 : vector<1x2x256xf32> to vector<2x256xf32>
    %245 = vector.broadcast %242 : f32 to vector<2x256xf32>
    %246 = arith.mulf %244, %245 : vector<2x256xf32>
    %247 = arith.addf %241, %246 : vector<2x256xf32>
    %c24 = arith.constant 24 : index
    %248 = memref.load %arg2[%c24] : memref<98xf32, #tpu.memory_space<smem>>
    %c0_88 = arith.constant 0 : index
    %c0_89 = arith.constant 0 : index
    %c128_90 = arith.constant 128 : index
    %249 = vector.load %arg4[%c0_88, %c0_89, %c128_90] : memref<2x2x512xf32, #tpu.memory_space<vmem>>, vector<1x2x256xf32>
    %250 = vector.shape_cast %249 : vector<1x2x256xf32> to vector<2x256xf32>
    %251 = vector.broadcast %248 : f32 to vector<2x256xf32>
    %252 = arith.mulf %250, %251 : vector<2x256xf32>
    %253 = arith.addf %247, %252 : vector<2x256xf32>
    %c31 = arith.constant 31 : index
    %254 = memref.load %arg2[%c31] : memref<98xf32, #tpu.memory_space<smem>>
    %c0_91 = arith.constant 0 : index
    %c0_92 = arith.constant 0 : index
    %c144 = arith.constant 144 : index
    %255 = vector.load %arg4[%c0_91, %c0_92, %c144] : memref<2x2x512xf32, #tpu.memory_space<vmem>>, vector<1x2x256xf32>
    %256 = vector.shape_cast %255 : vector<1x2x256xf32> to vector<2x256xf32>
    %257 = vector.broadcast %254 : f32 to vector<2x256xf32>
    %258 = arith.mulf %256, %257 : vector<2x256xf32>
    %259 = arith.addf %253, %258 : vector<2x256xf32>
    %c38 = arith.constant 38 : index
    %260 = memref.load %arg2[%c38] : memref<98xf32, #tpu.memory_space<smem>>
    %c0_93 = arith.constant 0 : index
    %c0_94 = arith.constant 0 : index
    %c160 = arith.constant 160 : index
    %261 = vector.load %arg4[%c0_93, %c0_94, %c160] : memref<2x2x512xf32, #tpu.memory_space<vmem>>, vector<1x2x256xf32>
    %262 = vector.shape_cast %261 : vector<1x2x256xf32> to vector<2x256xf32>
    %263 = vector.broadcast %260 : f32 to vector<2x256xf32>
    %264 = arith.mulf %262, %263 : vector<2x256xf32>
    %265 = arith.addf %259, %264 : vector<2x256xf32>
    %c45 = arith.constant 45 : index
    %266 = memref.load %arg2[%c45] : memref<98xf32, #tpu.memory_space<smem>>
    %c0_95 = arith.constant 0 : index
    %c0_96 = arith.constant 0 : index
    %c176 = arith.constant 176 : index
    %267 = vector.load %arg4[%c0_95, %c0_96, %c176] : memref<2x2x512xf32, #tpu.memory_space<vmem>>, vector<1x2x256xf32>
    %268 = vector.shape_cast %267 : vector<1x2x256xf32> to vector<2x256xf32>
    %269 = vector.broadcast %266 : f32 to vector<2x256xf32>
    %270 = arith.mulf %268, %269 : vector<2x256xf32>
    %271 = arith.addf %265, %270 : vector<2x256xf32>
    %272 = arith.addf %187, %271 : vector<2x256xf32>
    %c4 = arith.constant 4 : index
    %273 = memref.load %arg2[%c4] : memref<98xf32, #tpu.memory_space<smem>>
    %c0_97 = arith.constant 0 : index
    %c0_98 = arith.constant 0 : index
    %c81 = arith.constant 81 : index
    %274 = vector.load %arg4[%c0_97, %c0_98, %c81] : memref<2x2x512xf32, #tpu.memory_space<vmem>>, vector<1x2x256xf32>
    %275 = vector.shape_cast %274 : vector<1x2x256xf32> to vector<2x256xf32>
    %276 = vector.broadcast %273 : f32 to vector<2x256xf32>
    %277 = arith.mulf %275, %276 : vector<2x256xf32>
    %c11 = arith.constant 11 : index
    %278 = memref.load %arg2[%c11] : memref<98xf32, #tpu.memory_space<smem>>
    %c0_99 = arith.constant 0 : index
    %c0_100 = arith.constant 0 : index
    %c97 = arith.constant 97 : index
    %279 = vector.load %arg4[%c0_99, %c0_100, %c97] : memref<2x2x512xf32, #tpu.memory_space<vmem>>, vector<1x2x256xf32>
    %280 = vector.shape_cast %279 : vector<1x2x256xf32> to vector<2x256xf32>
    %281 = vector.broadcast %278 : f32 to vector<2x256xf32>
    %282 = arith.mulf %280, %281 : vector<2x256xf32>
    %283 = arith.addf %277, %282 : vector<2x256xf32>
    %c18 = arith.constant 18 : index
    %284 = memref.load %arg2[%c18] : memref<98xf32, #tpu.memory_space<smem>>
    %c0_101 = arith.constant 0 : index
    %c0_102 = arith.constant 0 : index
    %c113 = arith.constant 113 : index
    %285 = vector.load %arg4[%c0_101, %c0_102, %c113] : memref<2x2x512xf32, #tpu.memory_space<vmem>>, vector<1x2x256xf32>
    %286 = vector.shape_cast %285 : vector<1x2x256xf32> to vector<2x256xf32>
    %287 = vector.broadcast %284 : f32 to vector<2x256xf32>
    %288 = arith.mulf %286, %287 : vector<2x256xf32>
    %289 = arith.addf %283, %288 : vector<2x256xf32>
    %c25 = arith.constant 25 : index
    %290 = memref.load %arg2[%c25] : memref<98xf32, #tpu.memory_space<smem>>
    %c0_103 = arith.constant 0 : index
    %c0_104 = arith.constant 0 : index
    %c129 = arith.constant 129 : index
    %291 = vector.load %arg4[%c0_103, %c0_104, %c129] : memref<2x2x512xf32, #tpu.memory_space<vmem>>, vector<1x2x256xf32>
    %292 = vector.shape_cast %291 : vector<1x2x256xf32> to vector<2x256xf32>
    %293 = vector.broadcast %290 : f32 to vector<2x256xf32>
    %294 = arith.mulf %292, %293 : vector<2x256xf32>
    %295 = arith.addf %289, %294 : vector<2x256xf32>
    %c32 = arith.constant 32 : index
    %296 = memref.load %arg2[%c32] : memref<98xf32, #tpu.memory_space<smem>>
    %c0_105 = arith.constant 0 : index
    %c0_106 = arith.constant 0 : index
    %c145 = arith.constant 145 : index
    %297 = vector.load %arg4[%c0_105, %c0_106, %c145] : memref<2x2x512xf32, #tpu.memory_space<vmem>>, vector<1x2x256xf32>
    %298 = vector.shape_cast %297 : vector<1x2x256xf32> to vector<2x256xf32>
    %299 = vector.broadcast %296 : f32 to vector<2x256xf32>
    %300 = arith.mulf %298, %299 : vector<2x256xf32>
    %301 = arith.addf %295, %300 : vector<2x256xf32>
    %c39 = arith.constant 39 : index
    %302 = memref.load %arg2[%c39] : memref<98xf32, #tpu.memory_space<smem>>
    %c0_107 = arith.constant 0 : index
    %c0_108 = arith.constant 0 : index
    %c161 = arith.constant 161 : index
    %303 = vector.load %arg4[%c0_107, %c0_108, %c161] : memref<2x2x512xf32, #tpu.memory_space<vmem>>, vector<1x2x256xf32>
    %304 = vector.shape_cast %303 : vector<1x2x256xf32> to vector<2x256xf32>
    %305 = vector.broadcast %302 : f32 to vector<2x256xf32>
    %306 = arith.mulf %304, %305 : vector<2x256xf32>
    %307 = arith.addf %301, %306 : vector<2x256xf32>
    %c46 = arith.constant 46 : index
    %308 = memref.load %arg2[%c46] : memref<98xf32, #tpu.memory_space<smem>>
    %c0_109 = arith.constant 0 : index
    %c0_110 = arith.constant 0 : index
    %c177 = arith.constant 177 : index
    %309 = vector.load %arg4[%c0_109, %c0_110, %c177] : memref<2x2x512xf32, #tpu.memory_space<vmem>>, vector<1x2x256xf32>
    %310 = vector.shape_cast %309 : vector<1x2x256xf32> to vector<2x256xf32>
    %311 = vector.broadcast %308 : f32 to vector<2x256xf32>
    %312 = arith.mulf %310, %311 : vector<2x256xf32>
    %313 = arith.addf %307, %312 : vector<2x256xf32>
    %314 = arith.mulf %59, %313 : vector<2x256xf32>
    %315 = arith.addf %230, %314 : vector<2x256xf32>
    %c5 = arith.constant 5 : index
    %316 = memref.load %arg2[%c5] : memref<98xf32, #tpu.memory_space<smem>>
    %c0_111 = arith.constant 0 : index
    %c0_112 = arith.constant 0 : index
    %c82 = arith.constant 82 : index
    %317 = vector.load %arg4[%c0_111, %c0_112, %c82] : memref<2x2x512xf32, #tpu.memory_space<vmem>>, vector<1x2x256xf32>
    %318 = vector.shape_cast %317 : vector<1x2x256xf32> to vector<2x256xf32>
    %319 = vector.broadcast %316 : f32 to vector<2x256xf32>
    %320 = arith.mulf %318, %319 : vector<2x256xf32>
    %c12 = arith.constant 12 : index
    %321 = memref.load %arg2[%c12] : memref<98xf32, #tpu.memory_space<smem>>
    %c0_113 = arith.constant 0 : index
    %c0_114 = arith.constant 0 : index
    %c98 = arith.constant 98 : index
    %322 = vector.load %arg4[%c0_113, %c0_114, %c98] : memref<2x2x512xf32, #tpu.memory_space<vmem>>, vector<1x2x256xf32>
    %323 = vector.shape_cast %322 : vector<1x2x256xf32> to vector<2x256xf32>
    %324 = vector.broadcast %321 : f32 to vector<2x256xf32>
    %325 = arith.mulf %323, %324 : vector<2x256xf32>
    %326 = arith.addf %320, %325 : vector<2x256xf32>
    %c19 = arith.constant 19 : index
    %327 = memref.load %arg2[%c19] : memref<98xf32, #tpu.memory_space<smem>>
    %c0_115 = arith.constant 0 : index
    %c0_116 = arith.constant 0 : index
    %c114 = arith.constant 114 : index
    %328 = vector.load %arg4[%c0_115, %c0_116, %c114] : memref<2x2x512xf32, #tpu.memory_space<vmem>>, vector<1x2x256xf32>
    %329 = vector.shape_cast %328 : vector<1x2x256xf32> to vector<2x256xf32>
    %330 = vector.broadcast %327 : f32 to vector<2x256xf32>
    %331 = arith.mulf %329, %330 : vector<2x256xf32>
    %332 = arith.addf %326, %331 : vector<2x256xf32>
    %c26 = arith.constant 26 : index
    %333 = memref.load %arg2[%c26] : memref<98xf32, #tpu.memory_space<smem>>
    %c0_117 = arith.constant 0 : index
    %c0_118 = arith.constant 0 : index
    %c130 = arith.constant 130 : index
    %334 = vector.load %arg4[%c0_117, %c0_118, %c130] : memref<2x2x512xf32, #tpu.memory_space<vmem>>, vector<1x2x256xf32>
    %335 = vector.shape_cast %334 : vector<1x2x256xf32> to vector<2x256xf32>
    %336 = vector.broadcast %333 : f32 to vector<2x256xf32>
    %337 = arith.mulf %335, %336 : vector<2x256xf32>
    %338 = arith.addf %332, %337 : vector<2x256xf32>
    %c33 = arith.constant 33 : index
    %339 = memref.load %arg2[%c33] : memref<98xf32, #tpu.memory_space<smem>>
    %c0_119 = arith.constant 0 : index
    %c0_120 = arith.constant 0 : index
    %c146 = arith.constant 146 : index
    %340 = vector.load %arg4[%c0_119, %c0_120, %c146] : memref<2x2x512xf32, #tpu.memory_space<vmem>>, vector<1x2x256xf32>
    %341 = vector.shape_cast %340 : vector<1x2x256xf32> to vector<2x256xf32>
    %342 = vector.broadcast %339 : f32 to vector<2x256xf32>
    %343 = arith.mulf %341, %342 : vector<2x256xf32>
    %344 = arith.addf %338, %343 : vector<2x256xf32>
    %c40 = arith.constant 40 : index
    %345 = memref.load %arg2[%c40] : memref<98xf32, #tpu.memory_space<smem>>
    %c0_121 = arith.constant 0 : index
    %c0_122 = arith.constant 0 : index
    %c162 = arith.constant 162 : index
    %346 = vector.load %arg4[%c0_121, %c0_122, %c162] : memref<2x2x512xf32, #tpu.memory_space<vmem>>, vector<1x2x256xf32>
    %347 = vector.shape_cast %346 : vector<1x2x256xf32> to vector<2x256xf32>
    %348 = vector.broadcast %345 : f32 to vector<2x256xf32>
    %349 = arith.mulf %347, %348 : vector<2x256xf32>
    %350 = arith.addf %344, %349 : vector<2x256xf32>
    %c47 = arith.constant 47 : index
    %351 = memref.load %arg2[%c47] : memref<98xf32, #tpu.memory_space<smem>>
    %c0_123 = arith.constant 0 : index
    %c0_124 = arith.constant 0 : index
    %c178 = arith.constant 178 : index
    %352 = vector.load %arg4[%c0_123, %c0_124, %c178] : memref<2x2x512xf32, #tpu.memory_space<vmem>>, vector<1x2x256xf32>
    %353 = vector.shape_cast %352 : vector<1x2x256xf32> to vector<2x256xf32>
    %354 = vector.broadcast %351 : f32 to vector<2x256xf32>
    %355 = arith.mulf %353, %354 : vector<2x256xf32>
    %356 = arith.addf %350, %355 : vector<2x256xf32>
    %357 = arith.mulf %70, %356 : vector<2x256xf32>
    %358 = arith.addf %272, %357 : vector<2x256xf32>
    %c6 = arith.constant 6 : index
    %359 = memref.load %arg2[%c6] : memref<98xf32, #tpu.memory_space<smem>>
    %c0_125 = arith.constant 0 : index
    %c0_126 = arith.constant 0 : index
    %c83 = arith.constant 83 : index
    %360 = vector.load %arg4[%c0_125, %c0_126, %c83] : memref<2x2x512xf32, #tpu.memory_space<vmem>>, vector<1x2x256xf32>
    %361 = vector.shape_cast %360 : vector<1x2x256xf32> to vector<2x256xf32>
    %362 = vector.broadcast %359 : f32 to vector<2x256xf32>
    %363 = arith.mulf %361, %362 : vector<2x256xf32>
    %c13 = arith.constant 13 : index
    %364 = memref.load %arg2[%c13] : memref<98xf32, #tpu.memory_space<smem>>
    %c0_127 = arith.constant 0 : index
    %c0_128 = arith.constant 0 : index
    %c99 = arith.constant 99 : index
    %365 = vector.load %arg4[%c0_127, %c0_128, %c99] : memref<2x2x512xf32, #tpu.memory_space<vmem>>, vector<1x2x256xf32>
    %366 = vector.shape_cast %365 : vector<1x2x256xf32> to vector<2x256xf32>
    %367 = vector.broadcast %364 : f32 to vector<2x256xf32>
    %368 = arith.mulf %366, %367 : vector<2x256xf32>
    %369 = arith.addf %363, %368 : vector<2x256xf32>
    %c20 = arith.constant 20 : index
    %370 = memref.load %arg2[%c20] : memref<98xf32, #tpu.memory_space<smem>>
    %c0_129 = arith.constant 0 : index
    %c0_130 = arith.constant 0 : index
    %c115 = arith.constant 115 : index
    %371 = vector.load %arg4[%c0_129, %c0_130, %c115] : memref<2x2x512xf32, #tpu.memory_space<vmem>>, vector<1x2x256xf32>
    %372 = vector.shape_cast %371 : vector<1x2x256xf32> to vector<2x256xf32>
    %373 = vector.broadcast %370 : f32 to vector<2x256xf32>
    %374 = arith.mulf %372, %373 : vector<2x256xf32>
    %375 = arith.addf %369, %374 : vector<2x256xf32>
    %c27 = arith.constant 27 : index
    %376 = memref.load %arg2[%c27] : memref<98xf32, #tpu.memory_space<smem>>
    %c0_131 = arith.constant 0 : index
    %c0_132 = arith.constant 0 : index
    %c131 = arith.constant 131 : index
    %377 = vector.load %arg4[%c0_131, %c0_132, %c131] : memref<2x2x512xf32, #tpu.memory_space<vmem>>, vector<1x2x256xf32>
    %378 = vector.shape_cast %377 : vector<1x2x256xf32> to vector<2x256xf32>
    %379 = vector.broadcast %376 : f32 to vector<2x256xf32>
    %380 = arith.mulf %378, %379 : vector<2x256xf32>
    %381 = arith.addf %375, %380 : vector<2x256xf32>
    %c34 = arith.constant 34 : index
    %382 = memref.load %arg2[%c34] : memref<98xf32, #tpu.memory_space<smem>>
    %c0_133 = arith.constant 0 : index
    %c0_134 = arith.constant 0 : index
    %c147 = arith.constant 147 : index
    %383 = vector.load %arg4[%c0_133, %c0_134, %c147] : memref<2x2x512xf32, #tpu.memory_space<vmem>>, vector<1x2x256xf32>
    %384 = vector.shape_cast %383 : vector<1x2x256xf32> to vector<2x256xf32>
    %385 = vector.broadcast %382 : f32 to vector<2x256xf32>
    %386 = arith.mulf %384, %385 : vector<2x256xf32>
    %387 = arith.addf %381, %386 : vector<2x256xf32>
    %c41 = arith.constant 41 : index
    %388 = memref.load %arg2[%c41] : memref<98xf32, #tpu.memory_space<smem>>
    %c0_135 = arith.constant 0 : index
    %c0_136 = arith.constant 0 : index
    %c163 = arith.constant 163 : index
    %389 = vector.load %arg4[%c0_135, %c0_136, %c163] : memref<2x2x512xf32, #tpu.memory_space<vmem>>, vector<1x2x256xf32>
    %390 = vector.shape_cast %389 : vector<1x2x256xf32> to vector<2x256xf32>
    %391 = vector.broadcast %388 : f32 to vector<2x256xf32>
    %392 = arith.mulf %390, %391 : vector<2x256xf32>
    %393 = arith.addf %387, %392 : vector<2x256xf32>
    %c48 = arith.constant 48 : index
    %394 = memref.load %arg2[%c48] : memref<98xf32, #tpu.memory_space<smem>>
    %c0_137 = arith.constant 0 : index
    %c0_138 = arith.constant 0 : index
    %c179 = arith.constant 179 : index
    %395 = vector.load %arg4[%c0_137, %c0_138, %c179] : memref<2x2x512xf32, #tpu.memory_space<vmem>>, vector<1x2x256xf32>
    %396 = vector.shape_cast %395 : vector<1x2x256xf32> to vector<2x256xf32>
    %397 = vector.broadcast %394 : f32 to vector<2x256xf32>
    %398 = arith.mulf %396, %397 : vector<2x256xf32>
    %399 = arith.addf %393, %398 : vector<2x256xf32>
    %400 = arith.mulf %81, %399 : vector<2x256xf32>
    %401 = arith.addf %315, %400 : vector<2x256xf32>
    %c49 = arith.constant 49 : index
    %402 = memref.load %arg2[%c49] : memref<98xf32, #tpu.memory_space<smem>>
    %c1_139 = arith.constant 1 : index
    %c0_140 = arith.constant 0 : index
    %c77_141 = arith.constant 77 : index
    %403 = vector.load %arg4[%c1_139, %c0_140, %c77_141] : memref<2x2x512xf32, #tpu.memory_space<vmem>>, vector<1x2x256xf32>
    %404 = vector.shape_cast %403 : vector<1x2x256xf32> to vector<2x256xf32>
    %405 = vector.broadcast %402 : f32 to vector<2x256xf32>
    %406 = arith.mulf %404, %405 : vector<2x256xf32>
    %c56 = arith.constant 56 : index
    %407 = memref.load %arg2[%c56] : memref<98xf32, #tpu.memory_space<smem>>
    %c1_142 = arith.constant 1 : index
    %c0_143 = arith.constant 0 : index
    %c93_144 = arith.constant 93 : index
    %408 = vector.load %arg4[%c1_142, %c0_143, %c93_144] : memref<2x2x512xf32, #tpu.memory_space<vmem>>, vector<1x2x256xf32>
    %409 = vector.shape_cast %408 : vector<1x2x256xf32> to vector<2x256xf32>
    %410 = vector.broadcast %407 : f32 to vector<2x256xf32>
    %411 = arith.mulf %409, %410 : vector<2x256xf32>
    %412 = arith.addf %406, %411 : vector<2x256xf32>
    %c63 = arith.constant 63 : index
    %413 = memref.load %arg2[%c63] : memref<98xf32, #tpu.memory_space<smem>>
    %c1_145 = arith.constant 1 : index
    %c0_146 = arith.constant 0 : index
    %c109_147 = arith.constant 109 : index
    %414 = vector.load %arg4[%c1_145, %c0_146, %c109_147] : memref<2x2x512xf32, #tpu.memory_space<vmem>>, vector<1x2x256xf32>
    %415 = vector.shape_cast %414 : vector<1x2x256xf32> to vector<2x256xf32>
    %416 = vector.broadcast %413 : f32 to vector<2x256xf32>
    %417 = arith.mulf %415, %416 : vector<2x256xf32>
    %418 = arith.addf %412, %417 : vector<2x256xf32>
    %c70 = arith.constant 70 : index
    %419 = memref.load %arg2[%c70] : memref<98xf32, #tpu.memory_space<smem>>
    %c1_148 = arith.constant 1 : index
    %c0_149 = arith.constant 0 : index
    %c125_150 = arith.constant 125 : index
    %420 = vector.load %arg4[%c1_148, %c0_149, %c125_150] : memref<2x2x512xf32, #tpu.memory_space<vmem>>, vector<1x2x256xf32>
    %421 = vector.shape_cast %420 : vector<1x2x256xf32> to vector<2x256xf32>
    %422 = vector.broadcast %419 : f32 to vector<2x256xf32>
    %423 = arith.mulf %421, %422 : vector<2x256xf32>
    %424 = arith.addf %418, %423 : vector<2x256xf32>
    %c77_151 = arith.constant 77 : index
    %425 = memref.load %arg2[%c77_151] : memref<98xf32, #tpu.memory_space<smem>>
    %c1_152 = arith.constant 1 : index
    %c0_153 = arith.constant 0 : index
    %c141_154 = arith.constant 141 : index
    %426 = vector.load %arg4[%c1_152, %c0_153, %c141_154] : memref<2x2x512xf32, #tpu.memory_space<vmem>>, vector<1x2x256xf32>
    %427 = vector.shape_cast %426 : vector<1x2x256xf32> to vector<2x256xf32>
    %428 = vector.broadcast %425 : f32 to vector<2x256xf32>
    %429 = arith.mulf %427, %428 : vector<2x256xf32>
    %430 = arith.addf %424, %429 : vector<2x256xf32>
    %c84 = arith.constant 84 : index
    %431 = memref.load %arg2[%c84] : memref<98xf32, #tpu.memory_space<smem>>
    %c1_155 = arith.constant 1 : index
    %c0_156 = arith.constant 0 : index
    %c157_157 = arith.constant 157 : index
    %432 = vector.load %arg4[%c1_155, %c0_156, %c157_157] : memref<2x2x512xf32, #tpu.memory_space<vmem>>, vector<1x2x256xf32>
    %433 = vector.shape_cast %432 : vector<1x2x256xf32> to vector<2x256xf32>
    %434 = vector.broadcast %431 : f32 to vector<2x256xf32>
    %435 = arith.mulf %433, %434 : vector<2x256xf32>
    %436 = arith.addf %430, %435 : vector<2x256xf32>
    %c91 = arith.constant 91 : index
    %437 = memref.load %arg2[%c91] : memref<98xf32, #tpu.memory_space<smem>>
    %c1_158 = arith.constant 1 : index
    %c0_159 = arith.constant 0 : index
    %c173_160 = arith.constant 173 : index
    %438 = vector.load %arg4[%c1_158, %c0_159, %c173_160] : memref<2x2x512xf32, #tpu.memory_space<vmem>>, vector<1x2x256xf32>
    %439 = vector.shape_cast %438 : vector<1x2x256xf32> to vector<2x256xf32>
    %440 = vector.broadcast %437 : f32 to vector<2x256xf32>
    %441 = arith.mulf %439, %440 : vector<2x256xf32>
    %442 = arith.addf %436, %441 : vector<2x256xf32>
    %443 = arith.mulf %26, %442 : vector<2x256xf32>
    %444 = arith.addf %358, %443 : vector<2x256xf32>
    %c50 = arith.constant 50 : index
    %445 = memref.load %arg2[%c50] : memref<98xf32, #tpu.memory_space<smem>>
    %c1_161 = arith.constant 1 : index
    %c0_162 = arith.constant 0 : index
    %c78_163 = arith.constant 78 : index
    %446 = vector.load %arg4[%c1_161, %c0_162, %c78_163] : memref<2x2x512xf32, #tpu.memory_space<vmem>>, vector<1x2x256xf32>
    %447 = vector.shape_cast %446 : vector<1x2x256xf32> to vector<2x256xf32>
    %448 = vector.broadcast %445 : f32 to vector<2x256xf32>
    %449 = arith.mulf %447, %448 : vector<2x256xf32>
    %c57 = arith.constant 57 : index
    %450 = memref.load %arg2[%c57] : memref<98xf32, #tpu.memory_space<smem>>
    %c1_164 = arith.constant 1 : index
    %c0_165 = arith.constant 0 : index
    %c94_166 = arith.constant 94 : index
    %451 = vector.load %arg4[%c1_164, %c0_165, %c94_166] : memref<2x2x512xf32, #tpu.memory_space<vmem>>, vector<1x2x256xf32>
    %452 = vector.shape_cast %451 : vector<1x2x256xf32> to vector<2x256xf32>
    %453 = vector.broadcast %450 : f32 to vector<2x256xf32>
    %454 = arith.mulf %452, %453 : vector<2x256xf32>
    %455 = arith.addf %449, %454 : vector<2x256xf32>
    %c64 = arith.constant 64 : index
    %456 = memref.load %arg2[%c64] : memref<98xf32, #tpu.memory_space<smem>>
    %c1_167 = arith.constant 1 : index
    %c0_168 = arith.constant 0 : index
    %c110_169 = arith.constant 110 : index
    %457 = vector.load %arg4[%c1_167, %c0_168, %c110_169] : memref<2x2x512xf32, #tpu.memory_space<vmem>>, vector<1x2x256xf32>
    %458 = vector.shape_cast %457 : vector<1x2x256xf32> to vector<2x256xf32>
    %459 = vector.broadcast %456 : f32 to vector<2x256xf32>
    %460 = arith.mulf %458, %459 : vector<2x256xf32>
    %461 = arith.addf %455, %460 : vector<2x256xf32>
    %c71 = arith.constant 71 : index
    %462 = memref.load %arg2[%c71] : memref<98xf32, #tpu.memory_space<smem>>
    %c1_170 = arith.constant 1 : index
    %c0_171 = arith.constant 0 : index
    %c126_172 = arith.constant 126 : index
    %463 = vector.load %arg4[%c1_170, %c0_171, %c126_172] : memref<2x2x512xf32, #tpu.memory_space<vmem>>, vector<1x2x256xf32>
    %464 = vector.shape_cast %463 : vector<1x2x256xf32> to vector<2x256xf32>
    %465 = vector.broadcast %462 : f32 to vector<2x256xf32>
    %466 = arith.mulf %464, %465 : vector<2x256xf32>
    %467 = arith.addf %461, %466 : vector<2x256xf32>
    %c78_173 = arith.constant 78 : index
    %468 = memref.load %arg2[%c78_173] : memref<98xf32, #tpu.memory_space<smem>>
    %c1_174 = arith.constant 1 : index
    %c0_175 = arith.constant 0 : index
    %c142_176 = arith.constant 142 : index
    %469 = vector.load %arg4[%c1_174, %c0_175, %c142_176] : memref<2x2x512xf32, #tpu.memory_space<vmem>>, vector<1x2x256xf32>
    %470 = vector.shape_cast %469 : vector<1x2x256xf32> to vector<2x256xf32>
    %471 = vector.broadcast %468 : f32 to vector<2x256xf32>
    %472 = arith.mulf %470, %471 : vector<2x256xf32>
    %473 = arith.addf %467, %472 : vector<2x256xf32>
    %c85 = arith.constant 85 : index
    %474 = memref.load %arg2[%c85] : memref<98xf32, #tpu.memory_space<smem>>
    %c1_177 = arith.constant 1 : index
    %c0_178 = arith.constant 0 : index
    %c158_179 = arith.constant 158 : index
    %475 = vector.load %arg4[%c1_177, %c0_178, %c158_179] : memref<2x2x512xf32, #tpu.memory_space<vmem>>, vector<1x2x256xf32>
    %476 = vector.shape_cast %475 : vector<1x2x256xf32> to vector<2x256xf32>
    %477 = vector.broadcast %474 : f32 to vector<2x256xf32>
    %478 = arith.mulf %476, %477 : vector<2x256xf32>
    %479 = arith.addf %473, %478 : vector<2x256xf32>
    %c92 = arith.constant 92 : index
    %480 = memref.load %arg2[%c92] : memref<98xf32, #tpu.memory_space<smem>>
    %c1_180 = arith.constant 1 : index
    %c0_181 = arith.constant 0 : index
    %c174_182 = arith.constant 174 : index
    %481 = vector.load %arg4[%c1_180, %c0_181, %c174_182] : memref<2x2x512xf32, #tpu.memory_space<vmem>>, vector<1x2x256xf32>
    %482 = vector.shape_cast %481 : vector<1x2x256xf32> to vector<2x256xf32>
    %483 = vector.broadcast %480 : f32 to vector<2x256xf32>
    %484 = arith.mulf %482, %483 : vector<2x256xf32>
    %485 = arith.addf %479, %484 : vector<2x256xf32>
    %486 = arith.mulf %37, %485 : vector<2x256xf32>
    %487 = arith.addf %401, %486 : vector<2x256xf32>
    %c51 = arith.constant 51 : index
    %488 = memref.load %arg2[%c51] : memref<98xf32, #tpu.memory_space<smem>>
    %c1_183 = arith.constant 1 : index
    %c0_184 = arith.constant 0 : index
    %c79_185 = arith.constant 79 : index
    %489 = vector.load %arg4[%c1_183, %c0_184, %c79_185] : memref<2x2x512xf32, #tpu.memory_space<vmem>>, vector<1x2x256xf32>
    %490 = vector.shape_cast %489 : vector<1x2x256xf32> to vector<2x256xf32>
    %491 = vector.broadcast %488 : f32 to vector<2x256xf32>
    %492 = arith.mulf %490, %491 : vector<2x256xf32>
    %c58 = arith.constant 58 : index
    %493 = memref.load %arg2[%c58] : memref<98xf32, #tpu.memory_space<smem>>
    %c1_186 = arith.constant 1 : index
    %c0_187 = arith.constant 0 : index
    %c95_188 = arith.constant 95 : index
    %494 = vector.load %arg4[%c1_186, %c0_187, %c95_188] : memref<2x2x512xf32, #tpu.memory_space<vmem>>, vector<1x2x256xf32>
    %495 = vector.shape_cast %494 : vector<1x2x256xf32> to vector<2x256xf32>
    %496 = vector.broadcast %493 : f32 to vector<2x256xf32>
    %497 = arith.mulf %495, %496 : vector<2x256xf32>
    %498 = arith.addf %492, %497 : vector<2x256xf32>
    %c65 = arith.constant 65 : index
    %499 = memref.load %arg2[%c65] : memref<98xf32, #tpu.memory_space<smem>>
    %c1_189 = arith.constant 1 : index
    %c0_190 = arith.constant 0 : index
    %c111_191 = arith.constant 111 : index
    %500 = vector.load %arg4[%c1_189, %c0_190, %c111_191] : memref<2x2x512xf32, #tpu.memory_space<vmem>>, vector<1x2x256xf32>
    %501 = vector.shape_cast %500 : vector<1x2x256xf32> to vector<2x256xf32>
    %502 = vector.broadcast %499 : f32 to vector<2x256xf32>
    %503 = arith.mulf %501, %502 : vector<2x256xf32>
    %504 = arith.addf %498, %503 : vector<2x256xf32>
    %c72 = arith.constant 72 : index
    %505 = memref.load %arg2[%c72] : memref<98xf32, #tpu.memory_space<smem>>
    %c1_192 = arith.constant 1 : index
    %c0_193 = arith.constant 0 : index
    %c127_194 = arith.constant 127 : index
    %506 = vector.load %arg4[%c1_192, %c0_193, %c127_194] : memref<2x2x512xf32, #tpu.memory_space<vmem>>, vector<1x2x256xf32>
    %507 = vector.shape_cast %506 : vector<1x2x256xf32> to vector<2x256xf32>
    %508 = vector.broadcast %505 : f32 to vector<2x256xf32>
    %509 = arith.mulf %507, %508 : vector<2x256xf32>
    %510 = arith.addf %504, %509 : vector<2x256xf32>
    %c79_195 = arith.constant 79 : index
    %511 = memref.load %arg2[%c79_195] : memref<98xf32, #tpu.memory_space<smem>>
    %c1_196 = arith.constant 1 : index
    %c0_197 = arith.constant 0 : index
    %c143_198 = arith.constant 143 : index
    %512 = vector.load %arg4[%c1_196, %c0_197, %c143_198] : memref<2x2x512xf32, #tpu.memory_space<vmem>>, vector<1x2x256xf32>
    %513 = vector.shape_cast %512 : vector<1x2x256xf32> to vector<2x256xf32>
    %514 = vector.broadcast %511 : f32 to vector<2x256xf32>
    %515 = arith.mulf %513, %514 : vector<2x256xf32>
    %516 = arith.addf %510, %515 : vector<2x256xf32>
    %c86 = arith.constant 86 : index
    %517 = memref.load %arg2[%c86] : memref<98xf32, #tpu.memory_space<smem>>
    %c1_199 = arith.constant 1 : index
    %c0_200 = arith.constant 0 : index
    %c159_201 = arith.constant 159 : index
    %518 = vector.load %arg4[%c1_199, %c0_200, %c159_201] : memref<2x2x512xf32, #tpu.memory_space<vmem>>, vector<1x2x256xf32>
    %519 = vector.shape_cast %518 : vector<1x2x256xf32> to vector<2x256xf32>
    %520 = vector.broadcast %517 : f32 to vector<2x256xf32>
    %521 = arith.mulf %519, %520 : vector<2x256xf32>
    %522 = arith.addf %516, %521 : vector<2x256xf32>
    %c93_202 = arith.constant 93 : index
    %523 = memref.load %arg2[%c93_202] : memref<98xf32, #tpu.memory_space<smem>>
    %c1_203 = arith.constant 1 : index
    %c0_204 = arith.constant 0 : index
    %c175_205 = arith.constant 175 : index
    %524 = vector.load %arg4[%c1_203, %c0_204, %c175_205] : memref<2x2x512xf32, #tpu.memory_space<vmem>>, vector<1x2x256xf32>
    %525 = vector.shape_cast %524 : vector<1x2x256xf32> to vector<2x256xf32>
    %526 = vector.broadcast %523 : f32 to vector<2x256xf32>
    %527 = arith.mulf %525, %526 : vector<2x256xf32>
    %528 = arith.addf %522, %527 : vector<2x256xf32>
    %529 = arith.mulf %48, %528 : vector<2x256xf32>
    %530 = arith.addf %444, %529 : vector<2x256xf32>
    %c52 = arith.constant 52 : index
    %531 = memref.load %arg2[%c52] : memref<98xf32, #tpu.memory_space<smem>>
    %c1_206 = arith.constant 1 : index
    %c0_207 = arith.constant 0 : index
    %c80_208 = arith.constant 80 : index
    %532 = vector.load %arg4[%c1_206, %c0_207, %c80_208] : memref<2x2x512xf32, #tpu.memory_space<vmem>>, vector<1x2x256xf32>
    %533 = vector.shape_cast %532 : vector<1x2x256xf32> to vector<2x256xf32>
    %534 = vector.broadcast %531 : f32 to vector<2x256xf32>
    %535 = arith.mulf %533, %534 : vector<2x256xf32>
    %c59 = arith.constant 59 : index
    %536 = memref.load %arg2[%c59] : memref<98xf32, #tpu.memory_space<smem>>
    %c1_209 = arith.constant 1 : index
    %c0_210 = arith.constant 0 : index
    %c96_211 = arith.constant 96 : index
    %537 = vector.load %arg4[%c1_209, %c0_210, %c96_211] : memref<2x2x512xf32, #tpu.memory_space<vmem>>, vector<1x2x256xf32>
    %538 = vector.shape_cast %537 : vector<1x2x256xf32> to vector<2x256xf32>
    %539 = vector.broadcast %536 : f32 to vector<2x256xf32>
    %540 = arith.mulf %538, %539 : vector<2x256xf32>
    %541 = arith.addf %535, %540 : vector<2x256xf32>
    %c66 = arith.constant 66 : index
    %542 = memref.load %arg2[%c66] : memref<98xf32, #tpu.memory_space<smem>>
    %c1_212 = arith.constant 1 : index
    %c0_213 = arith.constant 0 : index
    %c112_214 = arith.constant 112 : index
    %543 = vector.load %arg4[%c1_212, %c0_213, %c112_214] : memref<2x2x512xf32, #tpu.memory_space<vmem>>, vector<1x2x256xf32>
    %544 = vector.shape_cast %543 : vector<1x2x256xf32> to vector<2x256xf32>
    %545 = vector.broadcast %542 : f32 to vector<2x256xf32>
    %546 = arith.mulf %544, %545 : vector<2x256xf32>
    %547 = arith.addf %541, %546 : vector<2x256xf32>
    %c73 = arith.constant 73 : index
    %548 = memref.load %arg2[%c73] : memref<98xf32, #tpu.memory_space<smem>>
    %c1_215 = arith.constant 1 : index
    %c0_216 = arith.constant 0 : index
    %c128_217 = arith.constant 128 : index
    %549 = vector.load %arg4[%c1_215, %c0_216, %c128_217] : memref<2x2x512xf32, #tpu.memory_space<vmem>>, vector<1x2x256xf32>
    %550 = vector.shape_cast %549 : vector<1x2x256xf32> to vector<2x256xf32>
    %551 = vector.broadcast %548 : f32 to vector<2x256xf32>
    %552 = arith.mulf %550, %551 : vector<2x256xf32>
    %553 = arith.addf %547, %552 : vector<2x256xf32>
    %c80_218 = arith.constant 80 : index
    %554 = memref.load %arg2[%c80_218] : memref<98xf32, #tpu.memory_space<smem>>
    %c1_219 = arith.constant 1 : index
    %c0_220 = arith.constant 0 : index
    %c144_221 = arith.constant 144 : index
    %555 = vector.load %arg4[%c1_219, %c0_220, %c144_221] : memref<2x2x512xf32, #tpu.memory_space<vmem>>, vector<1x2x256xf32>
    %556 = vector.shape_cast %555 : vector<1x2x256xf32> to vector<2x256xf32>
    %557 = vector.broadcast %554 : f32 to vector<2x256xf32>
    %558 = arith.mulf %556, %557 : vector<2x256xf32>
    %559 = arith.addf %553, %558 : vector<2x256xf32>
    %c87 = arith.constant 87 : index
    %560 = memref.load %arg2[%c87] : memref<98xf32, #tpu.memory_space<smem>>
    %c1_222 = arith.constant 1 : index
    %c0_223 = arith.constant 0 : index
    %c160_224 = arith.constant 160 : index
    %561 = vector.load %arg4[%c1_222, %c0_223, %c160_224] : memref<2x2x512xf32, #tpu.memory_space<vmem>>, vector<1x2x256xf32>
    %562 = vector.shape_cast %561 : vector<1x2x256xf32> to vector<2x256xf32>
    %563 = vector.broadcast %560 : f32 to vector<2x256xf32>
    %564 = arith.mulf %562, %563 : vector<2x256xf32>
    %565 = arith.addf %559, %564 : vector<2x256xf32>
    %c94_225 = arith.constant 94 : index
    %566 = memref.load %arg2[%c94_225] : memref<98xf32, #tpu.memory_space<smem>>
    %c1_226 = arith.constant 1 : index
    %c0_227 = arith.constant 0 : index
    %c176_228 = arith.constant 176 : index
    %567 = vector.load %arg4[%c1_226, %c0_227, %c176_228] : memref<2x2x512xf32, #tpu.memory_space<vmem>>, vector<1x2x256xf32>
    %568 = vector.shape_cast %567 : vector<1x2x256xf32> to vector<2x256xf32>
    %569 = vector.broadcast %566 : f32 to vector<2x256xf32>
    %570 = arith.mulf %568, %569 : vector<2x256xf32>
    %571 = arith.addf %565, %570 : vector<2x256xf32>
    %572 = arith.addf %487, %571 : vector<2x256xf32>
    %c53 = arith.constant 53 : index
    %573 = memref.load %arg2[%c53] : memref<98xf32, #tpu.memory_space<smem>>
    %c1_229 = arith.constant 1 : index
    %c0_230 = arith.constant 0 : index
    %c81_231 = arith.constant 81 : index
    %574 = vector.load %arg4[%c1_229, %c0_230, %c81_231] : memref<2x2x512xf32, #tpu.memory_space<vmem>>, vector<1x2x256xf32>
    %575 = vector.shape_cast %574 : vector<1x2x256xf32> to vector<2x256xf32>
    %576 = vector.broadcast %573 : f32 to vector<2x256xf32>
    %577 = arith.mulf %575, %576 : vector<2x256xf32>
    %c60 = arith.constant 60 : index
    %578 = memref.load %arg2[%c60] : memref<98xf32, #tpu.memory_space<smem>>
    %c1_232 = arith.constant 1 : index
    %c0_233 = arith.constant 0 : index
    %c97_234 = arith.constant 97 : index
    %579 = vector.load %arg4[%c1_232, %c0_233, %c97_234] : memref<2x2x512xf32, #tpu.memory_space<vmem>>, vector<1x2x256xf32>
    %580 = vector.shape_cast %579 : vector<1x2x256xf32> to vector<2x256xf32>
    %581 = vector.broadcast %578 : f32 to vector<2x256xf32>
    %582 = arith.mulf %580, %581 : vector<2x256xf32>
    %583 = arith.addf %577, %582 : vector<2x256xf32>
    %c67 = arith.constant 67 : index
    %584 = memref.load %arg2[%c67] : memref<98xf32, #tpu.memory_space<smem>>
    %c1_235 = arith.constant 1 : index
    %c0_236 = arith.constant 0 : index
    %c113_237 = arith.constant 113 : index
    %585 = vector.load %arg4[%c1_235, %c0_236, %c113_237] : memref<2x2x512xf32, #tpu.memory_space<vmem>>, vector<1x2x256xf32>
    %586 = vector.shape_cast %585 : vector<1x2x256xf32> to vector<2x256xf32>
    %587 = vector.broadcast %584 : f32 to vector<2x256xf32>
    %588 = arith.mulf %586, %587 : vector<2x256xf32>
    %589 = arith.addf %583, %588 : vector<2x256xf32>
    %c74 = arith.constant 74 : index
    %590 = memref.load %arg2[%c74] : memref<98xf32, #tpu.memory_space<smem>>
    %c1_238 = arith.constant 1 : index
    %c0_239 = arith.constant 0 : index
    %c129_240 = arith.constant 129 : index
    %591 = vector.load %arg4[%c1_238, %c0_239, %c129_240] : memref<2x2x512xf32, #tpu.memory_space<vmem>>, vector<1x2x256xf32>
    %592 = vector.shape_cast %591 : vector<1x2x256xf32> to vector<2x256xf32>
    %593 = vector.broadcast %590 : f32 to vector<2x256xf32>
    %594 = arith.mulf %592, %593 : vector<2x256xf32>
    %595 = arith.addf %589, %594 : vector<2x256xf32>
    %c81_241 = arith.constant 81 : index
    %596 = memref.load %arg2[%c81_241] : memref<98xf32, #tpu.memory_space<smem>>
    %c1_242 = arith.constant 1 : index
    %c0_243 = arith.constant 0 : index
    %c145_244 = arith.constant 145 : index
    %597 = vector.load %arg4[%c1_242, %c0_243, %c145_244] : memref<2x2x512xf32, #tpu.memory_space<vmem>>, vector<1x2x256xf32>
    %598 = vector.shape_cast %597 : vector<1x2x256xf32> to vector<2x256xf32>
    %599 = vector.broadcast %596 : f32 to vector<2x256xf32>
    %600 = arith.mulf %598, %599 : vector<2x256xf32>
    %601 = arith.addf %595, %600 : vector<2x256xf32>
    %c88 = arith.constant 88 : index
    %602 = memref.load %arg2[%c88] : memref<98xf32, #tpu.memory_space<smem>>
    %c1_245 = arith.constant 1 : index
    %c0_246 = arith.constant 0 : index
    %c161_247 = arith.constant 161 : index
    %603 = vector.load %arg4[%c1_245, %c0_246, %c161_247] : memref<2x2x512xf32, #tpu.memory_space<vmem>>, vector<1x2x256xf32>
    %604 = vector.shape_cast %603 : vector<1x2x256xf32> to vector<2x256xf32>
    %605 = vector.broadcast %602 : f32 to vector<2x256xf32>
    %606 = arith.mulf %604, %605 : vector<2x256xf32>
    %607 = arith.addf %601, %606 : vector<2x256xf32>
    %c95_248 = arith.constant 95 : index
    %608 = memref.load %arg2[%c95_248] : memref<98xf32, #tpu.memory_space<smem>>
    %c1_249 = arith.constant 1 : index
    %c0_250 = arith.constant 0 : index
    %c177_251 = arith.constant 177 : index
    %609 = vector.load %arg4[%c1_249, %c0_250, %c177_251] : memref<2x2x512xf32, #tpu.memory_space<vmem>>, vector<1x2x256xf32>
    %610 = vector.shape_cast %609 : vector<1x2x256xf32> to vector<2x256xf32>
    %611 = vector.broadcast %608 : f32 to vector<2x256xf32>
    %612 = arith.mulf %610, %611 : vector<2x256xf32>
    %613 = arith.addf %607, %612 : vector<2x256xf32>
    %614 = arith.mulf %59, %613 : vector<2x256xf32>
    %615 = arith.addf %530, %614 : vector<2x256xf32>
    %c54 = arith.constant 54 : index
    %616 = memref.load %arg2[%c54] : memref<98xf32, #tpu.memory_space<smem>>
    %c1_252 = arith.constant 1 : index
    %c0_253 = arith.constant 0 : index
    %c82_254 = arith.constant 82 : index
    %617 = vector.load %arg4[%c1_252, %c0_253, %c82_254] : memref<2x2x512xf32, #tpu.memory_space<vmem>>, vector<1x2x256xf32>
    %618 = vector.shape_cast %617 : vector<1x2x256xf32> to vector<2x256xf32>
    %619 = vector.broadcast %616 : f32 to vector<2x256xf32>
    %620 = arith.mulf %618, %619 : vector<2x256xf32>
    %c61 = arith.constant 61 : index
    %621 = memref.load %arg2[%c61] : memref<98xf32, #tpu.memory_space<smem>>
    %c1_255 = arith.constant 1 : index
    %c0_256 = arith.constant 0 : index
    %c98_257 = arith.constant 98 : index
    %622 = vector.load %arg4[%c1_255, %c0_256, %c98_257] : memref<2x2x512xf32, #tpu.memory_space<vmem>>, vector<1x2x256xf32>
    %623 = vector.shape_cast %622 : vector<1x2x256xf32> to vector<2x256xf32>
    %624 = vector.broadcast %621 : f32 to vector<2x256xf32>
    %625 = arith.mulf %623, %624 : vector<2x256xf32>
    %626 = arith.addf %620, %625 : vector<2x256xf32>
    %c68 = arith.constant 68 : index
    %627 = memref.load %arg2[%c68] : memref<98xf32, #tpu.memory_space<smem>>
    %c1_258 = arith.constant 1 : index
    %c0_259 = arith.constant 0 : index
    %c114_260 = arith.constant 114 : index
    %628 = vector.load %arg4[%c1_258, %c0_259, %c114_260] : memref<2x2x512xf32, #tpu.memory_space<vmem>>, vector<1x2x256xf32>
    %629 = vector.shape_cast %628 : vector<1x2x256xf32> to vector<2x256xf32>
    %630 = vector.broadcast %627 : f32 to vector<2x256xf32>
    %631 = arith.mulf %629, %630 : vector<2x256xf32>
    %632 = arith.addf %626, %631 : vector<2x256xf32>
    %c75 = arith.constant 75 : index
    %633 = memref.load %arg2[%c75] : memref<98xf32, #tpu.memory_space<smem>>
    %c1_261 = arith.constant 1 : index
    %c0_262 = arith.constant 0 : index
    %c130_263 = arith.constant 130 : index
    %634 = vector.load %arg4[%c1_261, %c0_262, %c130_263] : memref<2x2x512xf32, #tpu.memory_space<vmem>>, vector<1x2x256xf32>
    %635 = vector.shape_cast %634 : vector<1x2x256xf32> to vector<2x256xf32>
    %636 = vector.broadcast %633 : f32 to vector<2x256xf32>
    %637 = arith.mulf %635, %636 : vector<2x256xf32>
    %638 = arith.addf %632, %637 : vector<2x256xf32>
    %c82_264 = arith.constant 82 : index
    %639 = memref.load %arg2[%c82_264] : memref<98xf32, #tpu.memory_space<smem>>
    %c1_265 = arith.constant 1 : index
    %c0_266 = arith.constant 0 : index
    %c146_267 = arith.constant 146 : index
    %640 = vector.load %arg4[%c1_265, %c0_266, %c146_267] : memref<2x2x512xf32, #tpu.memory_space<vmem>>, vector<1x2x256xf32>
    %641 = vector.shape_cast %640 : vector<1x2x256xf32> to vector<2x256xf32>
    %642 = vector.broadcast %639 : f32 to vector<2x256xf32>
    %643 = arith.mulf %641, %642 : vector<2x256xf32>
    %644 = arith.addf %638, %643 : vector<2x256xf32>
    %c89 = arith.constant 89 : index
    %645 = memref.load %arg2[%c89] : memref<98xf32, #tpu.memory_space<smem>>
    %c1_268 = arith.constant 1 : index
    %c0_269 = arith.constant 0 : index
    %c162_270 = arith.constant 162 : index
    %646 = vector.load %arg4[%c1_268, %c0_269, %c162_270] : memref<2x2x512xf32, #tpu.memory_space<vmem>>, vector<1x2x256xf32>
    %647 = vector.shape_cast %646 : vector<1x2x256xf32> to vector<2x256xf32>
    %648 = vector.broadcast %645 : f32 to vector<2x256xf32>
    %649 = arith.mulf %647, %648 : vector<2x256xf32>
    %650 = arith.addf %644, %649 : vector<2x256xf32>
    %c96_271 = arith.constant 96 : index
    %651 = memref.load %arg2[%c96_271] : memref<98xf32, #tpu.memory_space<smem>>
    %c1_272 = arith.constant 1 : index
    %c0_273 = arith.constant 0 : index
    %c178_274 = arith.constant 178 : index
    %652 = vector.load %arg4[%c1_272, %c0_273, %c178_274] : memref<2x2x512xf32, #tpu.memory_space<vmem>>, vector<1x2x256xf32>
    %653 = vector.shape_cast %652 : vector<1x2x256xf32> to vector<2x256xf32>
    %654 = vector.broadcast %651 : f32 to vector<2x256xf32>
    %655 = arith.mulf %653, %654 : vector<2x256xf32>
    %656 = arith.addf %650, %655 : vector<2x256xf32>
    %657 = arith.mulf %70, %656 : vector<2x256xf32>
    %658 = arith.addf %572, %657 : vector<2x256xf32>
    %c55 = arith.constant 55 : index
    %659 = memref.load %arg2[%c55] : memref<98xf32, #tpu.memory_space<smem>>
    %c1_275 = arith.constant 1 : index
    %c0_276 = arith.constant 0 : index
    %c83_277 = arith.constant 83 : index
    %660 = vector.load %arg4[%c1_275, %c0_276, %c83_277] : memref<2x2x512xf32, #tpu.memory_space<vmem>>, vector<1x2x256xf32>
    %661 = vector.shape_cast %660 : vector<1x2x256xf32> to vector<2x256xf32>
    %662 = vector.broadcast %659 : f32 to vector<2x256xf32>
    %663 = arith.mulf %661, %662 : vector<2x256xf32>
    %c62 = arith.constant 62 : index
    %664 = memref.load %arg2[%c62] : memref<98xf32, #tpu.memory_space<smem>>
    %c1_278 = arith.constant 1 : index
    %c0_279 = arith.constant 0 : index
    %c99_280 = arith.constant 99 : index
    %665 = vector.load %arg4[%c1_278, %c0_279, %c99_280] : memref<2x2x512xf32, #tpu.memory_space<vmem>>, vector<1x2x256xf32>
    %666 = vector.shape_cast %665 : vector<1x2x256xf32> to vector<2x256xf32>
    %667 = vector.broadcast %664 : f32 to vector<2x256xf32>
    %668 = arith.mulf %666, %667 : vector<2x256xf32>
    %669 = arith.addf %663, %668 : vector<2x256xf32>
    %c69 = arith.constant 69 : index
    %670 = memref.load %arg2[%c69] : memref<98xf32, #tpu.memory_space<smem>>
    %c1_281 = arith.constant 1 : index
    %c0_282 = arith.constant 0 : index
    %c115_283 = arith.constant 115 : index
    %671 = vector.load %arg4[%c1_281, %c0_282, %c115_283] : memref<2x2x512xf32, #tpu.memory_space<vmem>>, vector<1x2x256xf32>
    %672 = vector.shape_cast %671 : vector<1x2x256xf32> to vector<2x256xf32>
    %673 = vector.broadcast %670 : f32 to vector<2x256xf32>
    %674 = arith.mulf %672, %673 : vector<2x256xf32>
    %675 = arith.addf %669, %674 : vector<2x256xf32>
    %c76 = arith.constant 76 : index
    %676 = memref.load %arg2[%c76] : memref<98xf32, #tpu.memory_space<smem>>
    %c1_284 = arith.constant 1 : index
    %c0_285 = arith.constant 0 : index
    %c131_286 = arith.constant 131 : index
    %677 = vector.load %arg4[%c1_284, %c0_285, %c131_286] : memref<2x2x512xf32, #tpu.memory_space<vmem>>, vector<1x2x256xf32>
    %678 = vector.shape_cast %677 : vector<1x2x256xf32> to vector<2x256xf32>
    %679 = vector.broadcast %676 : f32 to vector<2x256xf32>
    %680 = arith.mulf %678, %679 : vector<2x256xf32>
    %681 = arith.addf %675, %680 : vector<2x256xf32>
    %c83_287 = arith.constant 83 : index
    %682 = memref.load %arg2[%c83_287] : memref<98xf32, #tpu.memory_space<smem>>
    %c1_288 = arith.constant 1 : index
    %c0_289 = arith.constant 0 : index
    %c147_290 = arith.constant 147 : index
    %683 = vector.load %arg4[%c1_288, %c0_289, %c147_290] : memref<2x2x512xf32, #tpu.memory_space<vmem>>, vector<1x2x256xf32>
    %684 = vector.shape_cast %683 : vector<1x2x256xf32> to vector<2x256xf32>
    %685 = vector.broadcast %682 : f32 to vector<2x256xf32>
    %686 = arith.mulf %684, %685 : vector<2x256xf32>
    %687 = arith.addf %681, %686 : vector<2x256xf32>
    %c90 = arith.constant 90 : index
    %688 = memref.load %arg2[%c90] : memref<98xf32, #tpu.memory_space<smem>>
    %c1_291 = arith.constant 1 : index
    %c0_292 = arith.constant 0 : index
    %c163_293 = arith.constant 163 : index
    %689 = vector.load %arg4[%c1_291, %c0_292, %c163_293] : memref<2x2x512xf32, #tpu.memory_space<vmem>>, vector<1x2x256xf32>
    %690 = vector.shape_cast %689 : vector<1x2x256xf32> to vector<2x256xf32>
    %691 = vector.broadcast %688 : f32 to vector<2x256xf32>
    %692 = arith.mulf %690, %691 : vector<2x256xf32>
    %693 = arith.addf %687, %692 : vector<2x256xf32>
    %c97_294 = arith.constant 97 : index
    %694 = memref.load %arg2[%c97_294] : memref<98xf32, #tpu.memory_space<smem>>
    %c1_295 = arith.constant 1 : index
    %c0_296 = arith.constant 0 : index
    %c179_297 = arith.constant 179 : index
    %695 = vector.load %arg4[%c1_295, %c0_296, %c179_297] : memref<2x2x512xf32, #tpu.memory_space<vmem>>, vector<1x2x256xf32>
    %696 = vector.shape_cast %695 : vector<1x2x256xf32> to vector<2x256xf32>
    %697 = vector.broadcast %694 : f32 to vector<2x256xf32>
    %698 = arith.mulf %696, %697 : vector<2x256xf32>
    %699 = arith.addf %693, %698 : vector<2x256xf32>
    %700 = arith.mulf %81, %699 : vector<2x256xf32>
    %701 = arith.addf %615, %700 : vector<2x256xf32>
    %702 = arith.addf %658, %701 : vector<2x256xf32>
    %703 = arith.negf %702 : vector<2x256xf32>
    %704 = math.exp %703 : vector<2x256xf32>
    %cst_298 = arith.constant 1.000000e+00 : f32
    %705 = vector.broadcast %cst_298 : f32 to vector<2x256xf32>
    %706 = arith.addf %705, %704 : vector<2x256xf32>
    %707 = arith.divf %705, %706 : vector<2x256xf32>
    %c0_299 = arith.constant 0 : index
    %c0_300 = arith.constant 0 : index
    %708 = vector.load %arg1[%c0_299, %c0_300] : memref<2x1024xf32, #tpu.memory_space<vmem>>, vector<2x256xf32>
    %709 = arith.mulf %708, %707 : vector<2x256xf32>
    %c0_301 = arith.constant 0 : index
    %c0_302 = arith.constant 0 : index
    %710 = vector.load %arg3[%c0_301, %c0_302] : memref<2x1024xf32, #tpu.memory_space<vmem>>, vector<2x256xf32>
    tpu.vector_store %arg3[%c0_301, %c0_302], %709 {strides = array<i32>} : memref<2x1024xf32, #tpu.memory_space<vmem>>, vector<2x256xf32>,
    %c0_303 = arith.constant 0 : index
    %c256_304 = arith.constant 256 : index
    %711 = vector.load %arg1[%c0_303, %c256_304] : memref<2x1024xf32, #tpu.memory_space<vmem>>, vector<2x256xf32>
    %712 = arith.mulf %711, %707 : vector<2x256xf32>
    %c0_305 = arith.constant 0 : index
    %c256_306 = arith.constant 256 : index
    %713 = vector.load %arg3[%c0_305, %c256_306] : memref<2x1024xf32, #tpu.memory_space<vmem>>, vector<2x256xf32>
    tpu.vector_store %arg3[%c0_305, %c256_306], %712 {strides = array<i32>} : memref<2x1024xf32, #tpu.memory_space<vmem>>, vector<2x256xf32>,
    %c0_307 = arith.constant 0 : index
    %c512_308 = arith.constant 512 : index
    %714 = vector.load %arg1[%c0_307, %c512_308] : memref<2x1024xf32, #tpu.memory_space<vmem>>, vector<2x256xf32>
    %715 = arith.mulf %714, %707 : vector<2x256xf32>
    %c0_309 = arith.constant 0 : index
    %c512_310 = arith.constant 512 : index
    %716 = vector.load %arg3[%c0_309, %c512_310] : memref<2x1024xf32, #tpu.memory_space<vmem>>, vector<2x256xf32>
    tpu.vector_store %arg3[%c0_309, %c512_310], %715 {strides = array<i32>} : memref<2x1024xf32, #tpu.memory_space<vmem>>, vector<2x256xf32>,
    %c0_311 = arith.constant 0 : index
    %c768_312 = arith.constant 768 : index
    %717 = vector.load %arg1[%c0_311, %c768_312] : memref<2x1024xf32, #tpu.memory_space<vmem>>, vector<2x256xf32>
    %718 = arith.mulf %717, %707 : vector<2x256xf32>
    %c0_313 = arith.constant 0 : index
    %c768_314 = arith.constant 768 : index
    %719 = vector.load %arg3[%c0_313, %c768_314] : memref<2x1024xf32, #tpu.memory_space<vmem>>, vector<2x256xf32>
    tpu.vector_store %arg3[%c0_313, %c768_314], %718 {strides = array<i32>} : memref<2x1024xf32, #tpu.memory_space<vmem>>, vector<2x256xf32>,
    return
  }
  func.func @transform_0(%arg0: i32) -> (i32, i32) {
    %c0_i32 = arith.constant 0 : i32
    %c0_i32_0 = arith.constant 0 : i32
    return %arg0, %c0_i32 : i32, i32
  }
  func.func @transform_1(%arg0: i32) -> i32 {
    %c0_i32 = arith.constant 0 : i32
    %c0_i32_0 = arith.constant 0 : i32
    return %c0_i32 : i32
  }
  func.func @transform_2(%arg0: i32) -> (i32, i32) {
    %c0_i32 = arith.constant 0 : i32
    %c0_i32_0 = arith.constant 0 : i32
    return %arg0, %c0_i32 : i32, i32
  }
}

</mosaic_0001>

<bundles_post_ra>
// kernel: tpu_custom_call.1
= control target key start
LH: loop header
LB: loop body
LE: loop exit
PB: predicated region body
PF: predicated region fallthrough
CT: control target
= control target key end

     0   :  { %7 = vsyncpa [#allocation4], 0  ;;  %s2217_s0 = inlined_call_operand.hbm [shape: f32[2,1024], index: 0, kind: input, shape index: {}]   ;;  %s2218_s1 = inlined_call_operand.hbm [shape: f32[98], index: 1, kind: input, shape index: {}]   ;;  %s2219_s2 = inlined_call_operand.hbm [shape: f32[2,1024], index: 2, kind: output, shape index: {}]  }
   0x1   :  { %8 = vsyncpa [#allocation6], 0 }
   0x2   :  { %9 = vsyncpa [#allocation5], 0  ;;  %s15_s11 = sshll.u32 %s2217_s0, 4  ;;  %s1597_s12 = smov [#allocation3]   ;;  %s16_s11 = int_to_ptr.hbm [resolvable:$true] %s15_s11 }
   0x3   :  { %s17_s13 = sshll.u32 %s1597_s12, 4  ;;  %s26_s16 = sshll.u32 %s2218_s1, 4  ;;  %s18_s13 = int_to_ptr.vmem [resolvable:$true] %s17_s13  ;;  %s27_s16 = int_to_ptr.hbm [resolvable:$true] %s26_s16 }
   0x4   :  { %20 = dma.hbm_to_vmem [thread:$0]  %s16_s11, 256, %s18_s13, [#allocation4]  }
   0x5   :  { %s1598_s17 = smov [#allocation7]  }
   0x6   :  { %29 = dma.hbm_to_smem %s27_s16, 16, %s1598_s17, [#allocation6]  }
   0x7   :  { %1591 = dma.done.wait [#allocation4], 256  }
   0x8   :  { %1592 = vsyncadd [#allocation4], 4294967040 }
   0x9   :  { %1593 = dma.done.wait [#allocation6], 16  }
   0xa   :  { %1594 = vsyncadd [#allocation6], 4294967280 }
   0xb   :  { %38 = sfence }
   0xc   :  { %v121_v0 = vld [vmem:[#allocation3] sm:$0xf]  ;;  %v122_v1 = vld [vmem:[#allocation3 + $0x4] sm:$0xf]  ;;  %v1599_v2 = vmov 0.0   ;;  %s1412_s0 = sld [smem:[#allocation7 + $0x23]] }
   0xd   :  { %40 = vst [vmem:[#allocation2 + $0x6] sm:$0x3] %v1599_v2  ;;  %v123_v3 = vadd.f32 %v122_v1, %v121_v0  ;;  %v124_v4 = vmax.f32 %v121_v0, %v122_v1  ;;  %v125_v5 = vld [vmem:[#allocation3 + $0x8] sm:$0xf]  ;;  %v128_v6 = vld [vmem:[#allocation3 + $0xc] sm:$0xf] }
   0xe   :  { %39 = vst [vmem:[#allocation2] sm:$0x3] %v1599_v2  ;;  %s1410_s1 = sld [smem:[#allocation7 + $0x15]]  ;;  %s1600_s22 = smov 48   ;;  %vm145_vm0 = vcmask 916480   ;;  %vm156_vm1 = vcmask 785408  }
   0xf   :  { %v126_v7 = vadd.f32 %v125_v5, %v123_v3  ;;  %v127_v8 = vmax.f32 %v124_v4, %v125_v5  ;;  %42 = vst [vmem:[#allocation2 + $0x8] sm:$0x3] %v1599_v2  ;;  %s1408_s18 = sld [smem:[#allocation7 + $0x7]]  ;;  %s1601_s23 = smov 80   ;;  %vm167_vm2 = vcmask 654336   ;;  %vm179_vm3 = vcmask 523264  }
  0x10   :  { %43 = vst [vmem:[#allocation2 + $0xe] sm:$0x3] %v1599_v2  ;;  %s1413_s19 = sld [smem:[#allocation7 + $0x2a]]  ;;  %s1602_s25 = smov 112   ;;  %vm190_vm4 = vcmask 392192   ;;  %vm201_vm5 = vcmask 261120  }
  0x11   :  { %v129_v9 = vadd.f32 %v128_v6, %v126_v7  ;;  %v130_v10 = vmax.f32 %v127_v8, %v128_v6  ;;  %s1411_s20 = sld [smem:[#allocation7 + $0x1c]]  ;;  %s1603_s28 = smov 32   ;;  %vm216_vm6 = vcmask 416768   ;;  %vm301_vm7 = vcmask 408576  }
  0x12   :  { %s1409_s21 = sld [smem:[#allocation7 + $0xe]]  ;;  %v184_v12 = vstv %s1412_s0  ;;  %s1604_s29 = smov 64   ;;  %vm386_vm12 = vcmask 400384  }
  0x13   :  { %v131_v11 = vmul.f32 0.25, %v129_v9  ;;  %133 = vst [vmem:[#allocation2 + $0xa] sm:$0xf] %v130_v10  ;;  %s1417_s24 = sld [smem:[#allocation7 + $0x16]]  ;;  %s1605_s3 = smov 96  }
  0x14   :  { %v161_v13 = vstv %s1410_s1  ;;  %s1416_s26 = sld [smem:[#allocation7 + $0xf]] }
  0x15   :  { %132 = vst [vmem:[#allocation2 + $0x2] sm:$0xf] %v131_v11  ;;  %v139_v14 = vstv %s1408_s18  ;;  %s1415_s27 = sld [smem:[#allocation7 + $0x8]] }
  0x16   :  { %v195_v20 = vstv %s1413_s19  ;;  %s1420_s30 = sld [smem:[#allocation7 + $0x2b]] }
  0x17   :  { %v173_v21 = vstv %s1411_s20  ;;  %s1419_s4 = sld [smem:[#allocation7 + $0x24]] }
  0x18   :  { %v150_v22 = vstv %s1409_s21  ;;  %s1418_s5 = sld [smem:[#allocation7 + $0x1d]] }
  0x19   :  { %v250_v27 = vstv %s1417_s24  ;;  %s1424_s6 = sld [smem:[#allocation7 + $0x17]] }
  0x1a   :  { %v240_v28 = vstv %s1416_s26  ;;  %s1423_s7 = sld [smem:[#allocation7 + $0x10]] }
  0x1b   :  { %v230_v29 = vstv %s1415_s27  ;;  %s1422_s8 = sld [smem:[#allocation7 + $0x9]] }
  0x1c   :  { %v172_v15 = vld [vmem:[#allocation2 + $0x2] sm:$0x3f]  ;;  %v281_v34 = vstv %s1420_s30  ;;  %s1427_s9 = sld [smem:[#allocation7 + $0x2c]] }
  0x1d   :  { %v1638_v16 = vld [vmem:[#allocation2] sm:$0x3f]  ;;  %v185_v17 = vmul.f32 %v184_v12, %v172_v15  ;;  %v196_v23 = vmul.f32 %v195_v20, %v172_v15  ;;  %v174_v24 = vmul.f32 %v173_v21, %v172_v15  ;;  %v271_v35 = vstv %s1419_s4  ;;  %s1426_s10 = sld [smem:[#allocation7 + $0x25]] }
  0x1e   :  { %v162_v18 = vmul.f32 %v161_v13, %v1638_v16  ;;  %v140_v19 = vmul.f32 %v139_v14, %v1638_v16  ;;  %v151_v25 = vmul.f32 %v150_v22, %v1638_v16  ;;  %v1649_v26 = vld [vmem:[#allocation2] sm:$0x3f]  ;;  %v261_v36 = vstv %s1418_s5  ;;  %s1425_s11 = sld [smem:[#allocation7 + $0x1e]] }
  0x1f   :  { %187 = vrot.lane.b32.xlu2 %v185_v17, %s1600_s22  ;;  %v251_v30 = vmul.f32 %v250_v27, %v1649_v26  ;;  %v241_v31 = vmul.f32 %v240_v28, %v1649_v26  ;;  %v231_v32 = vmul.f32 %v230_v29, %v1649_v26  ;;  %v260_v33 = vld [vmem:[#allocation2 + $0x2] sm:$0x3f]  ;;  %v335_v41 = vstv %s1424_s6  ;;  %s1431_s12 = sld [smem:[#allocation7 + $0x18]] }
  0x20   :  { %164 = vrot.lane.b32.xlu1 %v162_v18, %s1601_s23  ;;  %142 = vrot.lane.b32.xlu0 %v140_v19, %s1602_s25  ;;  %v282_v37 = vmul.f32 %v281_v34, %v260_v33  ;;  %v272_v38 = vmul.f32 %v271_v35, %v260_v33  ;;  %v262_v39 = vmul.f32 %v261_v36, %v260_v33  ;;  %v1660_v40 = vld [vmem:[#allocation2] sm:$0x3f]  ;;  %v325_v42 = vstv %s1423_s7  ;;  %s1430_s13 = sld [smem:[#allocation7 + $0x11]] }
  0x21   :  { %v315_v43 = vstv %s1422_s8  ;;  %v336_v44 = vmul.f32 %v335_v41, %v1660_v40  ;;  %v326_v45 = vmul.f32 %v325_v42, %v1660_v40  ;;  %v345_v47 = vld [vmem:[#allocation2 + $0x2] sm:$0x3f]  ;;  %s1429_s14 = sld [smem:[#allocation7 + $0xa]] }
  0x22   :  { %v316_v46 = vmul.f32 %v315_v43, %v1660_v40  ;;  %v366_v48 = vstv %s1427_s9  ;;  %s1434_s15 = sld [smem:[#allocation7 + $0x2d]]  ;;  %v420_v54 = vld [vmem:[#allocation2 + $0x2] sm:$0xf] }
  0x23   :  { %v356_v49 = vstv %s1426_s10  ;;  %v367_v51 = vmul.f32 %v366_v48, %v345_v47  ;;  %v1671_v56 = vld [vmem:[#allocation2] sm:$0x3f]  ;;  %s1433_s16 = sld [smem:[#allocation7 + $0x26]] }
  0x24   :  { %v346_v50 = vstv %s1425_s11  ;;  %v357_v52 = vmul.f32 %v356_v49, %v345_v47  ;;  %s1432_s17 = sld [smem:[#allocation7 + $0x1f]]  ;;  %v431_v62 = vld [vmem:[#allocation2 + $0x2] sm:$0x3f] }
  0x25   :  { %v347_v53 = vmul.f32 %v346_v50, %v345_v47  ;;  %v421_v55 = vstv %s1431_s12  ;;  %s1438_s0 = sld [smem:[#allocation7 + $0x19]]  ;;  %v503_v6 = vld [vmem:[#allocation2 + $0x2] sm:$0x3f] }
  0x26   :  { %v410_v57 = vstv %s1430_s13  ;;  %v422_v59 = vmul.f32 %v421_v55, %v420_v54  ;;  %s1437_s1 = sld [smem:[#allocation7 + $0x12]]  ;;  %v1681_v8 = vld [vmem:[#allocation2] sm:$0x3f] }
  0x27   :  { %198 = vrot.lane.b32.xlu2 %v196_v23, %s1603_s28  ;;  %v400_v58 = vstv %s1429_s14  ;;  %v411_v60 = vmul.f32 %v410_v57, %v1671_v56  ;;  %s1436_s18 = sld [smem:[#allocation7 + $0xb]]  ;;  %v588_v21 = vld [vmem:[#allocation2 + $0x2] sm:$0x3f] }
  0x28   :  { %176 = vrot.lane.b32.xlu1 %v174_v24, %s1604_s29  ;;  %153 = vrot.lane.b32.xlu0 %v151_v25, %s1605_s3  ;;  %v401_v61 = vmul.f32 %v400_v58, %v1671_v56  ;;  %v452_v63 = vstv %s1434_s15  ;;  %s1441_s19 = sld [smem:[#allocation7 + $0x2e]]  ;;  %v1691_v23 = vld [vmem:[#allocation2] sm:$0x3f] }
  0x29   :  { %v442_v0 = vstv %s1433_s16  ;;  %v453_v3 = vmul.f32 %v452_v63, %v431_v62  ;;  %s1440_s20 = sld [smem:[#allocation7 + $0x27]]  ;;  %v673_v36 = vld [vmem:[#allocation2 + $0x2] sm:$0x3f] }
  0x2a   :  { %v432_v1 = vstv %s1432_s17  ;;  %v443_v4 = vmul.f32 %v442_v0, %v431_v62  ;;  %s1439_s21 = sld [smem:[#allocation7 + $0x20]]  ;;  %v768_v0 = vld [vmem:[#allocation2 + $0xa] sm:$0x3f] }
  0x2b   :  { %v433_v5 = vmul.f32 %v432_v1, %v431_v62  ;;  %v504_v7 = vstv %s1438_s0  ;;  %s1445_s24 = sld [smem:[#allocation7 + $0x1a]]  ;;  %v1727_v62 = vld [vmem:[#allocation2 + $0x8] sm:$0x3f] }
  0x2c   :  { %v493_v9 = vstv %s1437_s1  ;;  %v505_v11 = vmul.f32 %v504_v7, %v503_v6  ;;  %s1444_s26 = sld [smem:[#allocation7 + $0x13]] }
  0x2d   :  { %v483_v10 = vstv %s1436_s18  ;;  %v494_v12 = vmul.f32 %v493_v9, %v1681_v8  ;;  %s1443_s27 = sld [smem:[#allocation7 + $0xc]] }
  0x2e   :  { %v484_v13 = vmul.f32 %v483_v10, %v1681_v8  ;;  %v534_v14 = vstv %s1441_s19  ;;  %s1448_s30 = sld [smem:[#allocation7 + $0x2f]] }
  0x2f   :  { %253 = vrot.lane.b32.xlu2 %v251_v30, %s1601_s23  ;;  %v524_v15 = vstv %s1440_s20  ;;  %v535_v18 = vmul.f32 %v534_v14, %v503_v6  ;;  %s1447_s4 = sld [smem:[#allocation7 + $0x28]] }
  0x30   :  { %243 = vrot.lane.b32.xlu1 %v241_v31, %s1605_s3  ;;  %233 = vrot.lane.b32.xlu0 %v231_v32, %s1602_s25  ;;  %v514_v17 = vstv %s1439_s21  ;;  %v525_v19 = vmul.f32 %v524_v15, %v503_v6  ;;  %s1446_s5 = sld [smem:[#allocation7 + $0x21]] }
  0x31   :  { %v515_v20 = vmul.f32 %v514_v17, %v503_v6  ;;  %v589_v22 = vstv %s1445_s24  ;;  %s1452_s6 = sld [smem:[#allocation7 + $0x1b]] }
  0x32   :  { %v578_v24 = vstv %s1444_s26  ;;  %v590_v27 = vmul.f32 %v589_v22, %v588_v21  ;;  %s1451_s7 = sld [smem:[#allocation7 + $0x14]] }
  0x33   :  { %v568_v25 = vstv %s1443_s27  ;;  %v579_v28 = vmul.f32 %v578_v24, %v1691_v23  ;;  %s1450_s8 = sld [smem:[#allocation7 + $0xd]] }
  0x34   :  { %v569_v29 = vmul.f32 %v568_v25, %v1691_v23  ;;  %v619_v30 = vstv %s1448_s30  ;;  %s1455_s9 = sld [smem:[#allocation7 + $0x30]] }
  0x35   :  { %v609_v31 = vstv %s1447_s4  ;;  %v620_v33 = vmul.f32 %v619_v30, %v588_v21  ;;  %s1454_s10 = sld [smem:[#allocation7 + $0x29]] }
  0x36   :  { %v599_v32 = vstv %s1446_s5  ;;  %v610_v34 = vmul.f32 %v609_v31, %v588_v21  ;;  %s1453_s11 = sld [smem:[#allocation7 + $0x22]] }
  0x37   :  { %284 = vrot.lane.b32.xlu2 %v282_v37, %s1603_s28  ;;  %v600_v35 = vmul.f32 %v599_v32, %v588_v21  ;;  %v674_v37 = vstv %s1452_s6  ;;  %s1459_s12 = sld [smem:[#allocation7 + $0x46]]  ;;  %s1606_s6 = smov 51  }
  0x38   :  { %274 = vrot.lane.b32.xlu1 %v272_v38, %s1600_s22  ;;  %264 = vrot.lane.b32.xlu0 %v262_v39, %s1604_s29  ;;  %v1701_v38 = vld [vmem:[#allocation2] sm:$0x3f]  ;;  %v663_v39 = vstv %s1451_s7  ;;  %v675_v43 = vmul.f32 %v674_v37, %v673_v36  ;;  %s1458_s13 = sld [smem:[#allocation7 + $0x3f]] }
  0x39   :  { %v653_v42 = vstv %s1450_s8  ;;  %s1457_s14 = sld [smem:[#allocation7 + $0x38]]  ;;  %s1607_s8 = smov 50  }
  0x3a   :  { %s1464_s15 = sld [smem:[#allocation7 + $0x39]] }
  0x3b   :  { %v694_v47 = vstv %s1454_s10  ;;  %s1461_s16 = sld [smem:[#allocation7 + $0x54]]  ;;  %s1608_s10 = smov 49  }
  0x3c   :  { %v684_v49 = vstv %s1453_s11  ;;  %s1460_s17 = sld [smem:[#allocation7 + $0x4d]] }
  0x3d   :  { %v758_v54 = vstv %s1459_s12  ;;  %s134_s0 = sld [smem:[#allocation7]] }
  0x3e   :  { %v748_v55 = vstv %s1458_s13  ;;  %s1724_s1 = sld [smem:[#allocation7 + $0x47]]  ;;  %s1609_s13 = smov 47  }
  0x3f   :  { %338 = vrot.lane.b32.xlu2 %v336_v44, %s1601_s23  ;;  %v664_v44 = vmul.f32 %v663_v39, %v1701_v38  ;;  %v738_v58 = vstv %s1457_s14  ;;  %s1729_s18 = sld [smem:[#allocation7 + $0x40]]  ;;  %v852_v39 = vld [vmem:[#allocation2 + $0xa] sm:$0x3f] }
  0x40   :  { %328 = vrot.lane.b32.xlu1 %v326_v45, %s1605_s3  ;;  %318 = vrot.lane.b32.xlu0 %v316_v46, %s1602_s25  ;;  %v654_v45 = vmul.f32 %v653_v42, %v1701_v38  ;;  %v704_v46 = vstv %s1455_s9  ;;  %v822_v63 = vstv %s1464_s15  ;;  %s1462_s19 = sld [smem:[#allocation7 + $0x5b]]  ;;  %s1610_s15 = smov 46  }
  0x41   :  { %v705_v50 = vmul.f32 %v704_v46, %v673_v36  ;;  %v779_v1 = vstv %s1461_s16  ;;  %v823_v7 = vmul.f32 %v822_v63, %v1727_v62  ;;  %s1734_s20 = sld [smem:[#allocation7 + $0x1]] }
  0x42   :  { %v780_v9 = vmul.f32 %v779_v1, %v768_v0  ;;  %s1738_s21 = sld [smem:[#allocation7 + $0x3a]] }
  0x43   :  { %s1744_s24 = sld [smem:[#allocation7 + $0x55]] }
  0x44   :  { %v842_v14 = vstv %s1724_s1  ;;  %s1749_s26 = sld [smem:[#allocation7 + $0x4e]] }
  0x45   :  { %v832_v15 = vstv %s1729_s18  ;;  %s1759_s27 = sld [smem:[#allocation7 + $0x48]] }
  0x46   :  { %v833_v25 = vmul.f32 %v832_v15, %v1727_v62  ;;  %s1766_s30 = sld [smem:[#allocation7 + $0x41]] }
  0x47   :  { %369 = vrot.lane.b32.xlu2 %v367_v51, %s1603_s28  ;;  %v695_v51 = vmul.f32 %v694_v47, %v673_v36  ;;  %s1773_s4 = sld [smem:[#allocation7 + $0x5c]] }
  0x48   :  { %359 = vrot.lane.b32.xlu1 %v357_v52, %s1600_s22  ;;  %349 = vrot.lane.b32.xlu0 %v347_v53, %s1604_s29  ;;  %v685_v52 = vmul.f32 %v684_v49, %v673_v36  ;;  %v1715_v53 = vld [vmem:[#allocation2 + $0x8] sm:$0x3f]  ;;  %v906_v37 = vstv %s1738_s21  ;;  %s1786_s5 = sld [smem:[#allocation7 + $0x2]] }
  0x49   :  { %v1762_v36 = vld [vmem:[#allocation2 + $0x8] sm:$0x3f]  ;;  %v863_v42 = vstv %s1744_s24  ;;  %s1428_s7 = sld [smem:[#allocation7 + $0x3]] }
  0x4a   :  { %v853_v47 = vstv %s1749_s26  ;;  %s1435_s9 = sld [smem:[#allocation7 + $0x4]] }
  0x4b   :  { %s1442_s11 = sld [smem:[#allocation7 + $0x5]] }
  0x4c   :  { %s1449_s12 = sld [smem:[#allocation7 + $0x6]] }
  0x4d   :  { %s1456_s14 = sld [smem:[#allocation7 + $0x31]] }
  0x4e   :  { %s1879_s16 = sld [smem:[#allocation7 + $0x32]] }
  0x4f   :  { %424 = vrot.lane.b32.xlu2 %v422_v59, %s1601_s23  ;;  %v759_v59 = vmul.f32 %v758_v54, %v1715_v53  ;;  %s1887_s1 = sld [smem:[#allocation7 + $0x4f]] }
  0x50   :  { %413 = vrot.lane.b32.xlu1 %v411_v60, %s1605_s3  ;;  %403 = vrot.lane.b32.xlu0 %v401_v61, %s1602_s25  ;;  %v749_v60 = vmul.f32 %v748_v55, %v1715_v53  ;;  %v739_v61 = vmul.f32 %v738_v58, %v1715_v53  ;;  %v907_v58 = vmul.f32 %v906_v37, %v1762_v36  ;;  %s1890_s18 = sld [smem:[#allocation7 + $0x49]] }
  0x51   :  { %s1905_s21 = sld [smem:[#allocation7 + $0x5d]] }
  0x52   :  { %s1910_s24 = sld [smem:[#allocation7 + $0x33]] }
  0x53   :  { %s1914_s26 = sld [smem:[#allocation7 + $0x3c]] }
  0x57   :  { %455 = vrot.lane.b32.xlu2 %v453_v3, %s1603_s28 }
  0x58   :  { %445 = vrot.lane.b32.xlu1 %v443_v4, %s1600_s22  ;;  %435 = vrot.lane.b32.xlu0 %v433_v5, %s1604_s29  ;;  %v769_v5 = vstv %s1460_s17  ;;  %s1881_s17 = sld [smem:[#allocation7 + $0x3b]] }
  0x59   :  { %v770_v10 = vmul.f32 %v769_v5, %v768_v0 }
  0x5f   :  { %507 = vrot.lane.b32.xlu2 %v505_v11, %s1601_s23  ;;  %v136_v11 = vstv %s134_s0  ;;  %s1885_s0 = sld [smem:[#allocation7 + $0x56]] }
  0x60   :  { %496 = vrot.lane.b32.xlu1 %v494_v12, %s1605_s3  ;;  %486 = vrot.lane.b32.xlu0 %v484_v13, %s1602_s25  ;;  %v137_v13 = vmul.f32 %v136_v11, %v1638_v16  ;;  %v843_v16 = vmul.f32 %v842_v14, %v1727_v62 }
  0x67   :  { %537 = vrot.lane.b32.xlu2 %v535_v18, %s1603_s28 }
  0x68   :  { %527 = vrot.lane.b32.xlu1 %v525_v19, %s1600_s22  ;;  %517 = vrot.lane.b32.xlu0 %v515_v20, %s1604_s29  ;;  %v789_v20 = vstv %s1462_s19  ;;  %s1611_s19 = smov 45  }
  0x6f   :  { %592 = vrot.lane.b32.xlu2 %v590_v27, %s1601_s23 }
  0x70   :  { %581 = vrot.lane.b32.xlu1 %v579_v28, %s1605_s3  ;;  %571 = vrot.lane.b32.xlu0 %v569_v29, %s1602_s25  ;;  %v790_v28 = vmul.f32 %v789_v20, %v768_v0 }
  0x77   :  { %622 = vrot.lane.b32.xlu2 %v620_v33, %s1603_s28 }
  0x78   :  { %612 = vrot.lane.b32.xlu1 %v610_v34, %s1600_s22  ;;  %602 = vrot.lane.b32.xlu0 %v600_v35, %s1604_s29  ;;  %v227_v34 = vstv %s1734_s20  ;;  %s1900_s20 = sld [smem:[#allocation7 + $0x42]] }
  0x79   :  { %v1703_v41 = vpop.permute.xlu2 %187 }
  0x7a   :  { %v189_v31 = vrot.slane %v1703_v41, 6 }
  0x7c   :  { %v191_v49 = vsel %vm190_vm4, %v189_v31, %v1703_v41 }
  0x7f   :  { %677 = vrot.lane.b32.xlu2 %v675_v43, %s1601_s23 }
  0x80   :  { %666 = vrot.lane.b32.xlu1 %v664_v44, %s1605_s3  ;;  %656 = vrot.lane.b32.xlu0 %v654_v45, %s1602_s25 }
  0x81   :  { %v1710_v48 = vpop.permute.xlu2 %198 }
  0x82   :  { %v200_v43 = vrot.slane %v1710_v48, 6 }
  0x84   :  { %v202_v63 = vsel %vm201_vm5, %v200_v43, %v1710_v48  ;;  %v926_v48 = vstv %s1759_s27  ;;  %s1920_s27 = sld [smem:[#allocation7 + $0x57]] }
  0x85   :  { %v927_v15 = vmul.f32 %v926_v48, %v1762_v36 }
  0x87   :  { %707 = vrot.lane.b32.xlu2 %v705_v50, %s1603_s28 }
  0x88   :  { %697 = vrot.lane.b32.xlu1 %v695_v51, %s1600_s22  ;;  %687 = vrot.lane.b32.xlu0 %v685_v52, %s1604_s29  ;;  %v228_v51 = vmul.f32 %v227_v34, %v1649_v26 }
  0x89   :  { %v1717_v57 = vpop.permute.xlu2 %253 }
  0x8a   :  { %v255_v0 = vrot.slane %v1717_v57, 2 }
  0x8c   :  { %v256_v11 = vsel %vm167_vm2, %v1717_v57, %v255_v0  ;;  %v312_v57 = vstv %s1786_s5  ;;  %s1939_s5 = sld [smem:[#allocation7 + $0x43]] }
  0x8f   :  { %761 = vrot.lane.b32.xlu2 %v759_v59, %s1601_s23  ;;  %v864_v59 = vmul.f32 %v863_v42, %v852_v39 }
  0x90   :  { %751 = vrot.lane.b32.xlu1 %v749_v60, %s1605_s3  ;;  %741 = vrot.lane.b32.xlu0 %v739_v61, %s1602_s25  ;;  %v854_v61 = vmul.f32 %v853_v47, %v852_v39 }
  0x91   :  { %v1731_v3 = vpop.permute.xlu2 %284 }
  0x92   :  { %v165_v4 = vpop.permute.xlu1 %164  ;;  %v143_v6 = vpop.permute.xlu0 %142 }
  0x93   :  { %v144_v12 = vrot.slane %v143_v6, 2  ;;  %v166_v22 = vrot.slane %v165_v4, 2 }
  0x95   :  { %v146_v17 = vsel %vm145_vm0, %v143_v6, %v144_v12  ;;  %v168_v33 = vsel %vm167_vm2, %v165_v4, %v166_v22  ;;  %v916_v6 = vstv %s1766_s30  ;;  %s1924_s30 = sld [smem:[#allocation7 + $0x50]] }
  0x96   :  { %v148_v27 = vadd.f32 %v146_v17, %v137_v13  ;;  %v917_v17 = vmul.f32 %v916_v6, %v1762_v36 }
  0x97   :  { %825 = vrot.lane.b32.xlu2 %v823_v7, %s1602_s25 }
  0x98   :  { %782 = vrot.lane.b32.xlu1 %v780_v9, %s1600_s22  ;;  %772 = vrot.lane.b32.xlu0 %v770_v10, %s1604_s29  ;;  %v873_v10 = vstv %s1773_s4  ;;  %s1930_s4 = sld [smem:[#allocation7 + $0x4a]] }
  0x99   :  { %v1747_v18 = vpop.permute.xlu2 %338  ;;  %v874_v20 = vmul.f32 %v873_v10, %v852_v39 }
  0x9a   :  { %v177_v19 = vpop.permute.xlu1 %176  ;;  %v154_v21 = vpop.permute.xlu0 %153 }
  0x9b   :  { %v155_v24 = vrot.slane %v154_v21, 2  ;;  %v178_v29 = vrot.slane %v177_v19, 6 }
  0x9d   :  { %v157_v30 = vsel %vm156_vm1, %v154_v21, %v155_v24  ;;  %v180_v44 = vsel %vm179_vm3, %v178_v29, %v177_v19  ;;  %v286_v21 = vrot.slane %v1731_v3, 6 }
  0x9e   :  { %v159_v32 = vadd.f32 %v157_v30, %v148_v27 }
  0x9f   :  { %845 = vrot.lane.b32.xlu2 %v843_v16, %s1601_s23  ;;  %v287_v27 = vsel %vm201_vm5, %v286_v21, %v1731_v3  ;;  %v340_v3 = vrot.slane %v1747_v18, 2 }
  0xa0   :  { %835 = vrot.lane.b32.xlu1 %v833_v25, %s1605_s3  ;;  %v170_v35 = vadd.f32 %v168_v33, %v159_v32  ;;  %792 = vrot.lane.b32.xlu0 %v790_v28, %s1603_s28  ;;  %v313_v33 = vmul.f32 %v312_v57, %v1660_v40 }
  0xa1   :  { %v1770_v45 = vpop.permute.xlu2 %369 }
  0xa2   :  { %v244_v46 = vpop.permute.xlu1 %243  ;;  %v182_v50 = vadd.f32 %v180_v44, %v170_v35  ;;  %v234_v52 = vpop.permute.xlu0 %233 }
  0xa3   :  { %v245_v54 = vrot.slane %v244_v46, 2  ;;  %v235_v55 = vrot.slane %v234_v52, 2 }
  0xa4   :  { %v193_v60 = vadd.f32 %v191_v49, %v182_v50  ;;  %v341_v50 = vsel %vm167_vm2, %v1747_v18, %v340_v3 }
  0xa5   :  { %v236_v41 = vsel %vm145_vm0, %v234_v52, %v235_v55  ;;  %v246_v4 = vsel %vm156_vm1, %v244_v46, %v245_v54  ;;  %v371_v54 = vrot.slane %v1770_v45, 6 }
  0xa6   :  { %v204_v1 = vadd.f32 %v202_v63, %v193_v60  ;;  %v238_v26 = vadd.f32 %v236_v41, %v228_v51  ;;  %v397_v41 = vstv %s1428_s7  ;;  %s1944_s7 = sld [smem:[#allocation7 + $0x5e]] }
  0xa7   :  { %909 = vrot.lane.b32.xlu2 %v907_v58, %s1602_s25 }
  0xa8   :  { %866 = vrot.lane.b32.xlu1 %v864_v59, %s1600_s22  ;;  %206 = vst [vmem:[#allocation1] ss:$4 sm:$0xff] %v204_v1  ;;  %v248_v5 = vadd.f32 %v246_v4, %v238_v26  ;;  %856 = vrot.lane.b32.xlu0 %v854_v61, %s1604_s29  ;;  %v372_v26 = vsel %vm201_vm5, %v371_v54, %v1770_v45 }
  0xa9   :  { %v1791_v7 = vpop.permute.xlu2 %424  ;;  %v398_v4 = vmul.f32 %v397_v41, %v1671_v56 }
  0xaa   :  { %v275_v9 = vpop.permute.xlu1 %274  ;;  %v265_v12 = vpop.permute.xlu0 %264  ;;  %v258_v19 = vadd.f32 %v256_v11, %v248_v5 }
  0xab   :  { %v276_v13 = vrot.slane %v275_v9, 6  ;;  %v266_v14 = vrot.slane %v265_v12, 6 }
  0xad   :  { %v267_v22 = vsel %vm179_vm3, %v266_v14, %v265_v12  ;;  %v277_v16 = vsel %vm190_vm4, %v276_v13, %v275_v9  ;;  %v426_v13 = vrot.slane %v1791_v7, 6 }
  0xae   :  { %v269_v24 = vadd.f32 %v267_v22, %v258_v19 }
  0xaf   :  { %929 = vrot.lane.b32.xlu2 %v927_v15, %s1601_s23  ;;  %v207_v30 = vld.sshfl [vmem:[#allocation1] sm:$0xff pattern:$0x73625140]  ;;  %v208_v31 = vld.sshfl [vmem:[#allocation1 + $0x8] sm:$0xff pattern:$0x73625140]  ;;  %v427_v56 = vsel %vm167_vm2, %v426_v13, %v1791_v7 }
  0xb0   :  { %919 = vrot.lane.b32.xlu1 %v917_v17, %s1605_s3  ;;  %v279_v25 = vadd.f32 %v277_v16, %v269_v24  ;;  %876 = vrot.lane.b32.xlu0 %v874_v20, %s1603_s28  ;;  %v209_v35 = vld.sshfl [vmem:[#allocation1 + $0x10] sm:$0xff pattern:$0x73625140] }
  0xb1   :  { %v1807_v28 = vpop.permute.xlu2 %455 }
  0xb2   :  { %v329_v29 = vpop.permute.xlu1 %328  ;;  %v289_v32 = vadd.f32 %v287_v27, %v279_v25  ;;  %v319_v34 = vpop.permute.xlu0 %318  ;;  %v457_v16 = vrot.slane %v1807_v28, 6 }
  0xb3   :  { %v320_v37 = vrot.slane %v319_v34, 2  ;;  %v330_v39 = vrot.slane %v329_v29, 2 }
  0xb4   :  { %291 = vst [vmem:[#allocation1] ss:$4 sm:$0xff] %v289_v32  ;;  %v458_v32 = vsel %vm201_vm5, %v457_v16, %v1807_v28 }
  0xb5   :  { %v321_v42 = vsel %vm145_vm0, %v319_v34, %v320_v37  ;;  %v331_v44 = vsel %vm156_vm1, %v329_v29, %v330_v39 }
  0xb6   :  { %v323_v43 = vadd.f32 %v321_v42, %v313_v33 }
  0xb7   :  { %214 = vrot.lane.b32.xlu2 %v209_v35, %s1606_s6 }
  0xb8   :  { %212 = vrot.lane.b32.xlu1 %v208_v31, %s1606_s6  ;;  %210 = vrot.lane.b32.xlu0 %v207_v30, %s1606_s6  ;;  %v333_v40 = vadd.f32 %v331_v44, %v323_v43  ;;  %v480_v30 = vstv %s1435_s9  ;;  %s1950_s9 = sld [smem:[#allocation7 + $0x3d]] }
  0xb9   :  { %v1816_v46 = vpop.permute.xlu2 %507  ;;  %v481_v35 = vmul.f32 %v480_v30, %v1681_v8 }
  0xba   :  { %v360_v47 = vpop.permute.xlu1 %359  ;;  %v350_v49 = vpop.permute.xlu0 %349  ;;  %v343_v55 = vadd.f32 %v341_v50, %v333_v40  ;;  %v509_v44 = vrot.slane %v1816_v46, 6 }
  0xbb   :  { %v361_v51 = vrot.slane %v360_v47, 6  ;;  %v351_v52 = vrot.slane %v350_v49, 6  ;;  %v293_v58 = vld.sshfl [vmem:[#allocation1 + $0x8] sm:$0xff pattern:$0x73625140] }
  0xbc   :  { %v294_v59 = vld.sshfl [vmem:[#allocation1 + $0x10] sm:$0xff pattern:$0x73625140]  ;;  %v292_v61 = vld.sshfl [vmem:[#allocation1] sm:$0xff pattern:$0x73625140] }
  0xbd   :  { %v352_v60 = vsel %vm179_vm3, %v351_v52, %v350_v49  ;;  %v362_v0 = vsel %vm190_vm4, %v361_v51, %v360_v47  ;;  %v510_v51 = vsel %vm167_vm2, %v509_v44, %v1816_v46  ;;  %v565_v46 = vstv %s1442_s11  ;;  %s1956_s11 = sld [smem:[#allocation7 + $0x58]] }
  0xbe   :  { %v354_v63 = vadd.f32 %v352_v60, %v343_v55 }
  0xbf   :  { %299 = vrot.lane.b32.xlu2 %v294_v59, %s1607_s8 }
  0xc0   :  { %297 = vrot.lane.b32.xlu1 %v293_v58, %s1607_s8  ;;  %295 = vrot.lane.b32.xlu0 %v292_v61, %s1607_s8  ;;  %v364_v18 = vadd.f32 %v362_v0, %v354_v63 }
  0xc1   :  { %v1829_v6 = vpop.permute.xlu2 %537 }
  0xc2   :  { %v414_v1 = vpop.permute.xlu1 %413  ;;  %v404_v5 = vpop.permute.xlu0 %403  ;;  %v374_v48 = vadd.f32 %v372_v26, %v364_v18  ;;  %v539_v60 = vrot.slane %v1829_v6, 6 }
  0xc3   :  { %v415_v9 = vrot.slane %v414_v1, 2  ;;  %v405_v10 = vrot.slane %v404_v5, 2 }
  0xc4   :  { %376 = vst [vmem:[#allocation1] ss:$4 sm:$0xff] %v374_v48  ;;  %v540_v18 = vsel %vm201_vm5, %v539_v60, %v1829_v6 }
  0xc5   :  { %v406_v11 = vsel %vm145_vm0, %v404_v5, %v405_v10  ;;  %v416_v14 = vsel %vm156_vm1, %v414_v1, %v415_v9  ;;  %v566_v5 = vmul.f32 %v565_v46, %v1691_v23 }
  0xc6   :  { %v408_v12 = vadd.f32 %v406_v11, %v398_v4 }
  0xc8   :  { %v418_v15 = vadd.f32 %v416_v14, %v408_v12 }
  0xc9   :  { %v593_v57 = vpop.permute.xlu2 %592 }
  0xca   :  { %v446_v17 = vpop.permute.xlu1 %445  ;;  %v436_v45 = vpop.permute.xlu0 %435  ;;  %v429_v21 = vadd.f32 %v427_v56, %v418_v15  ;;  %v594_v13 = vrot.slane %v593_v57, 6 }
  0xcb   :  { %v447_v19 = vrot.slane %v446_v17, 6  ;;  %v437_v20 = vrot.slane %v436_v45, 6  ;;  %v379_v22 = vld.sshfl [vmem:[#allocation1 + $0x10] sm:$0xff pattern:$0x73625140] }
  0xcc   :  { %v378_v24 = vld.sshfl [vmem:[#allocation1 + $0x8] sm:$0xff pattern:$0x73625140]  ;;  %384 = vrot.lane.b32.xlu2 %v379_v22, %s1608_s10  ;;  %v377_v27 = vld.sshfl [vmem:[#allocation1] sm:$0xff pattern:$0x73625140]  ;;  %v595_v6 = vsel %vm167_vm2, %v594_v13, %v593_v57 }
  0xcd   :  { %v438_v25 = vsel %vm179_vm3, %v437_v20, %v436_v45  ;;  %382 = vrot.lane.b32.xlu1 %v378_v24, %s1608_s10  ;;  %380 = vrot.lane.b32.xlu0 %v377_v27, %s1608_s10  ;;  %v448_v7 = vsel %vm190_vm4, %v447_v19, %v446_v17 }
  0xce   :  { %v440_v29 = vadd.f32 %v438_v25, %v429_v21 }
  0xd0   :  { %v450_v31 = vadd.f32 %v448_v7, %v440_v29  ;;  %v650_v29 = vstv %s1449_s12  ;;  %s1960_s12 = sld [smem:[#allocation7 + $0x51]] }
  0xd1   :  { %v623_v40 = vpop.permute.xlu2 %622 }
  0xd2   :  { %v497_v33 = vpop.permute.xlu1 %496  ;;  %v460_v34 = vadd.f32 %v458_v32, %v450_v31  ;;  %v487_v37 = vpop.permute.xlu0 %486  ;;  %v624_v16 = vrot.slane %v623_v40, 6 }
  0xd3   :  { %v498_v39 = vrot.slane %v497_v33, 2  ;;  %v488_v42 = vrot.slane %v487_v37, 2 }
  0xd4   :  { %462 = vst [vmem:[#allocation1] ss:$4 sm:$0xff] %v460_v34  ;;  %v625_v30 = vsel %vm201_vm5, %v624_v16, %v623_v40  ;;  %v990_v16 = vstv %s1881_s17  ;;  %s1490_s17 = sld [smem:[#allocation7 + $0x5f]] }
  0xd5   :  { %v489_v43 = vsel %vm145_vm0, %v487_v37, %v488_v42  ;;  %v499_v47 = vsel %vm156_vm1, %v497_v33, %v498_v39  ;;  %v651_v33 = vmul.f32 %v650_v29, %v1701_v38  ;;  %v947_v29 = vstv %s1885_s0  ;;  %s2002_s0 = sld [smem:[#allocation7 + $0x3e]] }
  0xd6   :  { %v491_v3 = vadd.f32 %v489_v43, %v481_v35 }
  0xd8   :  { %v501_v49 = vadd.f32 %v499_v47, %v491_v3 }
  0xd9   :  { %v678_v1 = vpop.permute.xlu2 %677 }
  0xda   :  { %v528_v50 = vpop.permute.xlu1 %527  ;;  %v518_v28 = vpop.permute.xlu0 %517  ;;  %v512_v55 = vadd.f32 %v510_v51, %v501_v49  ;;  %v679_v3 = vrot.slane %v678_v1, 6 }
  0xdb   :  { %v529_v8 = vrot.slane %v528_v50, 6  ;;  %v519_v52 = vrot.slane %v518_v28, 6  ;;  %v465_v54 = vld.sshfl [vmem:[#allocation1 + $0x10] sm:$0xff pattern:$0x73625140] }
  0xdc   :  { %470 = vrot.lane.b32.xlu2 %v465_v54, %s1600_s22  ;;  %v464_v58 = vld.sshfl [vmem:[#allocation1 + $0x8] sm:$0xff pattern:$0x73625140]  ;;  %v463_v59 = vld.sshfl [vmem:[#allocation1] sm:$0xff pattern:$0x73625140]  ;;  %v680_v40 = vsel %vm167_vm2, %v679_v3, %v678_v1 }
  0xdd   :  { %v520_v61 = vsel %vm179_vm3, %v519_v52, %v518_v28  ;;  %468 = vrot.lane.b32.xlu1 %v464_v58, %s1600_s22  ;;  %466 = vrot.lane.b32.xlu0 %v463_v59, %s1600_s22  ;;  %v530_v41 = vsel %vm190_vm4, %v529_v8, %v528_v50 }
  0xde   :  { %v522_v63 = vadd.f32 %v520_v61, %v512_v55 }
  0xe0   :  { %v532_v0 = vadd.f32 %v530_v41, %v522_v63  ;;  %v735_v63 = vstv %s1456_s14  ;;  %s1979_s14 = sld [smem:[#allocation7 + $0x4b]] }
  0xe1   :  { %v708_v56 = vpop.permute.xlu2 %707 }
  0xe2   :  { %v582_v26 = vpop.permute.xlu1 %581  ;;  %v542_v4 = vadd.f32 %v540_v18, %v532_v0  ;;  %v572_v48 = vpop.permute.xlu0 %571  ;;  %v709_v55 = vrot.slane %v708_v56, 6 }
  0xe3   :  { %v583_v9 = vrot.slane %v582_v26, 2  ;;  %v573_v10 = vrot.slane %v572_v48, 2 }
  0xe4   :  { %544 = vst [vmem:[#allocation1] ss:$4 sm:$0xff] %v542_v4  ;;  %v710_v46 = vsel %vm201_vm5, %v709_v55, %v708_v56 }
  0xe5   :  { %v574_v11 = vsel %vm145_vm0, %v572_v48, %v573_v10  ;;  %v584_v14 = vsel %vm156_vm1, %v582_v26, %v583_v9  ;;  %v736_v26 = vmul.f32 %v735_v63, %v1715_v53 }
  0xe6   :  { %v576_v12 = vadd.f32 %v574_v11, %v566_v5 }
  0xe8   :  { %v586_v15 = vadd.f32 %v584_v14, %v576_v12 }
  0xe9   :  { %v762_v39 = vpop.permute.xlu2 %761 }
  0xea   :  { %v613_v17 = vpop.permute.xlu1 %612  ;;  %v603_v45 = vpop.permute.xlu0 %602  ;;  %v597_v21 = vadd.f32 %v595_v6, %v586_v15  ;;  %v763_v5 = vrot.slane %v762_v39, 2 }
  0xeb   :  { %v614_v19 = vrot.slane %v613_v17, 6  ;;  %v604_v20 = vrot.slane %v603_v45, 6  ;;  %v547_v23 = vld.sshfl [vmem:[#allocation1 + $0x10] sm:$0xff pattern:$0x73625140] }
  0xec   :  { %552 = vrot.lane.b32.xlu2 %v547_v23, %s1609_s13  ;;  %v546_v22 = vld.sshfl [vmem:[#allocation1 + $0x8] sm:$0xff pattern:$0x73625140]  ;;  %v545_v24 = vld.sshfl [vmem:[#allocation1] sm:$0xff pattern:$0x73625140]  ;;  %v764_v53 = vsel %vm167_vm2, %v762_v39, %v763_v5  ;;  %v1073_v5 = vstv %s1914_s26 }
  0xed   :  { %v605_v25 = vsel %vm179_vm3, %v604_v20, %v603_v45  ;;  %550 = vrot.lane.b32.xlu1 %v546_v22, %s1609_s13  ;;  %548 = vrot.lane.b32.xlu0 %v545_v24, %s1609_s13  ;;  %v615_v57 = vsel %vm190_vm4, %v614_v19, %v613_v17  ;;  %v819_v45 = vstv %s1879_s16  ;;  %v1897_v24 = vld [vmem:[#allocation2 + $0x8] sm:$0x3f]  ;;  %s1986_s16 = sld [smem:[#allocation7 + $0x44]] }
  0xee   :  { %v607_v27 = vadd.f32 %v605_v25, %v597_v21  ;;  %v820_v25 = vmul.f32 %v819_v45, %v1727_v62  ;;  %s2055_s26 = sld [smem:[#allocation7 + $0x61]] }
  0xf0   :  { %v617_v7 = vadd.f32 %v615_v57, %v607_v27  ;;  %v936_v57 = vld [vmem:[#allocation2 + $0xa] sm:$0x3f] }
  0xf1   :  { %v826_v60 = vpop.permute.xlu2 %825 }
  0xf2   :  { %v667_v31 = vpop.permute.xlu1 %666  ;;  %v627_v32 = vadd.f32 %v625_v30, %v617_v7  ;;  %v657_v34 = vpop.permute.xlu0 %656  ;;  %v827_v6 = vrot.slane %v826_v60, 2  ;;  %v937_v7 = vstv %s1887_s1  ;;  %s2007_s1 = sld [smem:[#allocation7 + $0x59]] }
  0xf3   :  { %v668_v35 = vrot.slane %v667_v31, 2  ;;  %v658_v37 = vrot.slane %v657_v34, 2 }
  0xf4   :  { %629 = vst [vmem:[#allocation1] ss:$4 sm:$0xff] %v627_v32  ;;  %v828_v30 = vsel %vm145_vm0, %v826_v60, %v827_v6  ;;  %v991_v32 = vmul.f32 %v990_v16, %v1897_v24  ;;  %v903_v60 = vstv %s1910_s24  ;;  %v1093_v16 = vld [vmem:[#allocation2 + $0xa] sm:$0x3f]  ;;  %s2035_s24 = sld [smem:[#allocation7 + $0x60]] }
  0xf5   :  { %v659_v42 = vsel %vm145_vm0, %v657_v34, %v658_v37  ;;  %v669_v44 = vsel %vm156_vm1, %v667_v31, %v668_v35  ;;  %v948_v34 = vmul.f32 %v947_v29, %v936_v57  ;;  %v938_v35 = vmul.f32 %v937_v7, %v936_v57 }
  0xf6   :  { %v661_v43 = vadd.f32 %v659_v42, %v651_v33  ;;  %v830_v37 = vadd.f32 %v828_v30, %v820_v25  ;;  %v1094_v25 = vstv %s1930_s4  ;;  %v1042_v29 = vstv %s1944_s7 }
  0xf8   :  { %v671_v47 = vadd.f32 %v669_v44, %v661_v43 }
  0xf9   :  { %v846_v13 = vpop.permute.xlu2 %845 }
  0xfa   :  { %v698_v49 = vpop.permute.xlu1 %697  ;;  %v688_v50 = vpop.permute.xlu0 %687  ;;  %v682_v8 = vadd.f32 %v680_v40, %v671_v47  ;;  %v847_v43 = vrot.slane %v846_v13, 2  ;;  %v1011_v40 = vstv %s1890_s18  ;;  %s2010_s18 = sld [smem:[#allocation7 + $0x52]] }
  0xfb   :  { %v699_v28 = vrot.slane %v698_v49, 6  ;;  %v689_v51 = vrot.slane %v688_v50, 6  ;;  %v632_v38 = vld.sshfl [vmem:[#allocation1 + $0x10] sm:$0xff pattern:$0x73625140] }
  0xfc   :  { %637 = vrot.lane.b32.xlu2 %v632_v38, %s1610_s15  ;;  %v631_v52 = vld.sshfl [vmem:[#allocation1 + $0x8] sm:$0xff pattern:$0x73625140]  ;;  %v630_v54 = vld.sshfl [vmem:[#allocation1] sm:$0xff pattern:$0x73625140]  ;;  %v1000_v38 = vstv %s1900_s20 }
  0xfd   :  { %v690_v58 = vsel %vm179_vm3, %v689_v51, %v688_v50  ;;  %635 = vrot.lane.b32.xlu1 %v631_v52, %s1610_s15  ;;  %633 = vrot.lane.b32.xlu0 %v630_v54, %s1610_s15  ;;  %v700_v61 = vsel %vm190_vm4, %v699_v28, %v698_v49  ;;  %v1010_v50 = vld [vmem:[#allocation2 + $0xa] sm:$0xf]  ;;  %v848_v52 = vsel %vm167_vm2, %v846_v13, %v847_v43  ;;  %s2018_s20 = sld [smem:[#allocation7 + $0x4c]] }
  0xfe   :  { %v692_v59 = vadd.f32 %v690_v58, %v682_v8  ;;  %v957_v8 = vstv %s1905_s21  ;;  %v1012_v54 = vmul.f32 %v1011_v40, %v1010_v50  ;;  %v1001_v58 = vmul.f32 %v1000_v38, %v1897_v24  ;;  %s2026_s21 = sld [smem:[#allocation7 + $0x45]] }
  0xff   :  { %v1157_v50 = vstv %s1950_s9  ;;  %v1114_v40 = vstv %s1956_s11 }
 0x100   :  { %v702_v41 = vadd.f32 %v700_v61, %v692_v59  ;;  %v958_v59 = vmul.f32 %v957_v8, %v936_v57  ;;  %v1083_v57 = vstv %s1939_s5 }
 0x101   :  { %v910_v3 = vpop.permute.xlu2 %909 }
 0x102   :  { %v752_v0 = vpop.permute.xlu1 %751  ;;  %v712_v18 = vadd.f32 %v710_v46, %v702_v41  ;;  %v742_v4 = vpop.permute.xlu0 %741  ;;  %v911_v61 = vrot.slane %v910_v3, 2 }
 0x103   :  { %v753_v1 = vrot.slane %v752_v0, 2  ;;  %v743_v48 = vrot.slane %v742_v4, 2 }
 0x104   :  { %714 = vst [vmem:[#allocation1] ss:$4 sm:$0xff] %v712_v18  ;;  %v904_v18 = vmul.f32 %v903_v60, %v1762_v36 }
 0x105   :  { %v754_v9 = vsel %vm156_vm1, %v752_v0, %v753_v1  ;;  %v744_v10 = vsel %vm145_vm0, %v742_v4, %v743_v48  ;;  %v1936_v4 = vld [vmem:[#allocation2 + $0x8] sm:$0x3f]  ;;  %v912_v48 = vsel %vm145_vm0, %v910_v3, %v911_v61 }
 0x106   :  { %v746_v11 = vadd.f32 %v744_v10, %v736_v26  ;;  %v1021_v10 = vld [vmem:[#allocation2 + $0xa] sm:$0x3f]  ;;  %v914_v13 = vadd.f32 %v912_v48, %v904_v18  ;;  %v1124_v18 = vstv %s1490_s17 }
 0x108   :  { %v756_v12 = vadd.f32 %v754_v9, %v746_v11  ;;  %v1032_v11 = vstv %s1920_s27  ;;  %s1503_s27 = sld [smem:[#allocation7 + $0x5a]] }
 0x109   :  { %v930_v1 = vpop.permute.xlu2 %929 }
 0x10a   :  { %v783_v14 = vpop.permute.xlu1 %782  ;;  %v766_v15 = vadd.f32 %v764_v53, %v756_v12  ;;  %v773_v17 = vpop.permute.xlu0 %772  ;;  %v1022_v53 = vstv %s1924_s30  ;;  %v1074_v12 = vmul.f32 %v1073_v5, %v1936_v4  ;;  %s1502_s30 = sld [smem:[#allocation7 + $0x53]] }
 0x10b   :  { %v784_v56 = vrot.slane %v783_v14, 6  ;;  %v774_v19 = vrot.slane %v773_v17, 6  ;;  %v717_v20 = vld.sshfl [vmem:[#allocation1 + $0x10] sm:$0xff pattern:$0x73625140] }
 0x10c   :  { %722 = vrot.lane.b32.xlu2 %v717_v20, %s1611_s19  ;;  %v716_v23 = vld.sshfl [vmem:[#allocation1 + $0x8] sm:$0xff pattern:$0x73625140]  ;;  %v715_v21 = vld.sshfl [vmem:[#allocation1] sm:$0xff pattern:$0x73625140] }
 0x10d   :  { %v775_v22 = vsel %vm179_vm3, %v774_v19, %v773_v17  ;;  %720 = vrot.lane.b32.xlu1 %v716_v23, %s1611_s19  ;;  %718 = vrot.lane.b32.xlu0 %v715_v21, %s1611_s19  ;;  %v785_v31 = vsel %vm190_vm4, %v784_v56, %v783_v14  ;;  %v1023_v17 = vmul.f32 %v1022_v53, %v1021_v10  ;;  %v931_v19 = vrot.slane %v930_v1, 2  ;;  %v2022_v53 = vld [vmem:[#allocation2 + $0x8] sm:$0x3f] }
 0x10e   :  { %v777_v27 = vadd.f32 %v775_v22, %v766_v15  ;;  %v1033_v15 = vmul.f32 %v1032_v11, %v1021_v10  ;;  %v1125_v11 = vmul.f32 %v1124_v18, %v1093_v16 }
 0x10f   :  { %v932_v30 = vsel %vm167_vm2, %v930_v1, %v931_v19 }
 0x110   :  { %v787_v39 = vadd.f32 %v785_v31, %v777_v27 }
 0x111   :  { %v215_v31 = vpop.permute.xlu2 %214 }
 0x112   :  { %v836_v33 = vpop.permute.xlu1 %835  ;;  %v793_v42 = vpop.permute.xlu0 %792 }
 0x113   :  { %v837_v62 = vrot.slane %v836_v33, 2  ;;  %v794_v44 = vrot.slane %v793_v42, 6 }
 0x114   :  { %993 = vrot.lane.b32.xlu2 %v991_v32, %s1602_s25  ;;  %v44_v32 = vlaneseq }
 0x115   :  { %v838_v47 = vsel %vm156_vm1, %v836_v33, %v837_v62  ;;  %v795_v49 = vsel %vm201_vm5, %v794_v44, %v793_v42  ;;  %950 = vrot.lane.b32.xlu1 %v948_v34, %s1600_s22  ;;  %940 = vrot.lane.b32.xlu0 %v938_v35, %s1604_s29  ;;  %v1095_v35 = vmul.f32 %v1094_v25, %v1093_v16 }
 0x116   :  { %v840_v28 = vadd.f32 %v838_v47, %v830_v37  ;;  %v797_v51 = vadd.f32 %v795_v49, %v787_v39  ;;  %v1084_v62 = vmul.f32 %v1083_v57, %v1936_v4  ;;  %v1043_v39 = vmul.f32 %v1042_v29, %v1021_v10  ;;  %v1983_v49 = vld [vmem:[#allocation2 + $0x8] sm:$0x3f] }
 0x117   :  { %v45_v44 = vand.u32 127, %v44_v32  ;;  %v1158_v38 = vmul.f32 %v1157_v50, %v1983_v49 }
 0x118   :  { %799 = vst [vmem:[#allocation1] ss:$4 sm:$0xff] %v797_v51  ;;  %v850_v63 = vadd.f32 %v848_v52, %v840_v28  ;;  %v1104_v28 = vstv %s1960_s12 }
 0x119   :  { %v46_v51 = vadd.s32 128, %v45_v44  ;;  %v300_v8 = vpop.permute.xlu2 %299 }
 0x11a   :  { %v867_v55 = vpop.permute.xlu1 %866  ;;  %v857_v41 = vpop.permute.xlu0 %856 }
 0x11b   :  { %v868_v46 = vrot.slane %v867_v55, 6  ;;  %v858_v0 = vrot.slane %v857_v41, 6  ;;  %v1994_v60 = vand.u32 15, %v46_v51 }
 0x11c   :  { %1014 = vrot.lane.b32.xlu2 %v1012_v54, %s1601_s23  ;;  %v1115_v54 = vmul.f32 %v1114_v40, %v1093_v16 }
 0x11d   :  { %v859_v26 = vsel %vm179_vm3, %v858_v0, %v857_v41  ;;  %1003 = vrot.lane.b32.xlu1 %v1001_v58, %s1605_s3  ;;  %960 = vrot.lane.b32.xlu0 %v958_v59, %s1603_s28  ;;  %v869_v36 = vsel %vm190_vm4, %v868_v46, %v867_v55  ;;  %v1105_v55 = vmul.f32 %v1104_v28, %v1093_v16  ;;  %v1177_v41 = vld [vmem:[#allocation2 + $0xa] sm:$0x3f]  ;;  %v1178_v46 = vstv %s1979_s14 }
 0x11e   :  { %v861_v9 = vadd.f32 %v859_v26, %v850_v63  ;;  %v1999_v63 = vand.u32 15, %v45_v44  ;;  %v1167_v0 = vstv %s1986_s16  ;;  %v50_v1 = vadd.s32 4294967293, %v1994_v60 }
 0x11f   :  { %v1962_v7 = vld.sshfl [vmem:[#allocation1 + $0x10] sm:$0xff pattern:$0x73625140]  ;;  %v1965_v33 = vld.sshfl [vmem:[#allocation1 + $0x8] sm:$0xff pattern:$0x73625140]  ;;  %v1179_v48 = vmul.f32 %v1178_v46, %v1177_v41  ;;  %v1168_v10 = vmul.f32 %v1167_v0, %v1983_v49  ;;  %v1292_v28 = vstv %s2055_s26 }
 0x120   :  { %v871_v6 = vadd.f32 %v869_v36, %v861_v9  ;;  %v1967_v34 = vld.sshfl [vmem:[#allocation1] sm:$0xff pattern:$0x73625140]  ;;  %v74_v26 = vadd.s32 4294967295, %v1994_v60  ;;  %v49_v5 = vadd.s32 4294967293, %v1999_v63  ;;  %v73_v9 = vadd.s32 4294967295, %v1999_v63 }
 0x121   :  { %vm52_vm8 = vcmp.ge.s32.totalorder %v50_v1, 0  ;;  %v1241_v36 = vstv %s2002_s0  ;;  %v62_v32 = vadd.s32 4294967294, %v1994_v60 }
 0x122   :  { %v920_v14 = vpop.permute.xlu1 %919  ;;  %v877_v56 = vpop.permute.xlu0 %876  ;;  %vm76_vm9 = vcmp.ge.s32.totalorder %v74_v26, 0  ;;  %vm51_vm10 = vcmp.ge.s32.totalorder %v49_v5, 0  ;;  %vm75_vm11 = vcmp.ge.s32.totalorder %v73_v9, 0 }
 0x123   :  { %v921_v45 = vrot.slane %v920_v14, 2  ;;  %v878_v20 = vrot.slane %v877_v56, 6  ;;  %vm64_vm13 = vcmp.ge.s32.totalorder %v62_v32, 0 }
 0x124   :  { %1076 = vrot.lane.b32.xlu2 %v1074_v12, %s1602_s25  ;;  %v1198_v12 = vstv %s2007_s1  ;;  %v2066_v50 = vsel %vm64_vm13, 1.0, %v1599_v2  ;;  %vm639_vm13 = vcmask 375808  }
 0x125   :  { %v922_v23 = vsel %vm156_vm1, %v920_v14, %v921_v45  ;;  %v879_v22 = vsel %vm201_vm5, %v878_v20, %v877_v56  ;;  %1035 = vrot.lane.b32.xlu1 %v1033_v15, %s1600_s22  ;;  %1025 = vrot.lane.b32.xlu0 %v1023_v17, %s1604_s29  ;;  %v2032_v14 = vsel %vm76_vm9, 1.0, %v1599_v2  ;;  %v1188_v15 = vstv %s2010_s18 }
 0x126   :  { %v924_v21 = vadd.f32 %v922_v23, %v914_v13  ;;  %v881_v27 = vadd.f32 %v879_v22, %v871_v6  ;;  %v2029_v13 = vsel %vm52_vm8, 1.0, %v1599_v2  ;;  %v385_v17 = vpop.permute.xlu2 %384  ;;  %v2039_v45 = vsel %vm51_vm10, 1.0, %v1599_v2 }
 0x127   :  { %v2043_v56 = vsel %vm75_vm11, 1.0, %v1599_v2  ;;  %v1242_v23 = vmul.f32 %v1241_v36, %v2022_v53  ;;  %vm554_vm9 = vcmask 384000  }
 0x128   :  { %883 = vst [vmem:[#allocation1] ss:$4 sm:$0xff] %v881_v27  ;;  %v1973_v3 = vadd.f32 %v932_v30, %v924_v21  ;;  %v1199_v21 = vmul.f32 %v1198_v12, %v1177_v41  ;;  %v1189_v27 = vmul.f32 %v1188_v15, %v1177_v41 }
 0x12a   :  { %v213_v37 = vpop.permute.xlu1 %212  ;;  %v211_v43 = vpop.permute.xlu0 %210 }
 0x12b   :  { %v1971_v42 = vsel %vm216_vm6, %v213_v37, %v215_v31  ;;  %v1976_v47 = vsel %vm216_vm6, %v211_v43, %v213_v37  ;;  %v1261_v37 = vld [vmem:[#allocation2 + $0xa] sm:$0x3f] }
 0x12c   :  { %1097 = vrot.lane.b32.xlu2 %v1095_v35, %s1601_s23  ;;  %v222_v22 = vmul.f32 %v2029_v13, %v1971_v42  ;;  %v221_v57 = vmul.f32 %v2039_v45, %v1976_v47  ;;  %v61_v35 = vadd.s32 4294967294, %v1999_v63  ;;  %v1208_v42 = vstv %s2035_s24 }
 0x12d   :  { %1086 = vrot.lane.b32.xlu1 %v1084_v62, %s1605_s3  ;;  %1045 = vrot.lane.b32.xlu0 %v1043_v39, %s1603_s28  ;;  %v1262_v62 = vstv %s2018_s20  ;;  %v1251_v39 = vstv %s2026_s21  ;;  %v1209_v47 = vmul.f32 %v1208_v42, %v1177_v41  ;;  %v1293_v0 = vmul.f32 %v1292_v28, %v1261_v37 }
 0x12e   :  { %v1263_v43 = vmul.f32 %v1262_v62, %v1261_v37  ;;  %vm63_vm14 = vcmp.ge.s32.totalorder %v61_v35, 0  ;;  %v1252_v44 = vmul.f32 %v1251_v39, %v2022_v53  ;;  %v110_v39 = vadd.s32 3, %v1994_v60 }
 0x12f   :  { %v2069_v40 = vsel %vm63_vm14, 1.0, %v1599_v2  ;;  %v109_v42 = vadd.s32 3, %v1999_v63 }
 0x130   :  { %vm114_vm14 = vcmp.lt.s32.totalorder %v110_v39, 16 }
 0x132   :  { %v298_v52 = vpop.permute.xlu1 %297  ;;  %v296_v59 = vpop.permute.xlu0 %295 }
 0x133   :  { %v1992_v58 = vsel %vm301_vm7, %v298_v52, %v300_v8  ;;  %v1997_v61 = vsel %vm301_vm7, %v296_v59, %v298_v52  ;;  %v1272_v8 = vstv %s1502_s30 }
 0x134   :  { %1160 = vrot.lane.b32.xlu2 %v1158_v38, %s1602_s25  ;;  %v1282_v38 = vstv %s1503_s27  ;;  %v307_v52 = vmul.f32 %v2066_v50, %v1992_v58  ;;  %v1273_v5 = vmul.f32 %v1272_v8, %v1261_v37  ;;  %v86_v58 = vadd.s32 1, %v1994_v60 }
 0x135   :  { %1117 = vrot.lane.b32.xlu1 %v1115_v54, %s1600_s22  ;;  %1107 = vrot.lane.b32.xlu0 %v1105_v55, %s1604_s29  ;;  %v306_v54 = vmul.f32 %v2069_v40, %v1997_v61  ;;  %v1283_v26 = vmul.f32 %v1282_v38, %v1261_v37  ;;  %v85_v61 = vadd.s32 1, %v1999_v63 }
 0x136   :  { %v471_v51 = vpop.permute.xlu2 %470  ;;  %vm90_vm15 = vcmp.lt.s32.totalorder %v86_v58, 16 }
 0x137   :  { %vm89_vm8 = vcmp.lt.s32.totalorder %v85_v61, 16  ;;  %v2093_v9 = vsel %vm90_vm15, 1.0, %v1599_v2  ;;  %vm113_vm15 = vcmp.lt.s32.totalorder %v109_v42, 16 }
 0x13c   :  { %1181 = vrot.lane.b32.xlu2 %v1179_v48, %s1601_s23 }
 0x13d   :  { %1170 = vrot.lane.b32.xlu1 %v1168_v10, %s1605_s3  ;;  %1127 = vrot.lane.b32.xlu0 %v1125_v11, %s1603_s28  ;;  %v2096_v10 = vsel %vm89_vm8, 1.0, %v1599_v2  ;;  %vm724_vm8 = vcmask 367616  }
 0x13f   :  { %v383_v6 = vpop.permute.xlu1 %382  ;;  %v381_v20 = vpop.permute.xlu0 %380 }
 0x140   :  { %v388_v19 = vsel %vm386_vm12, %v383_v6, %v385_v17  ;;  %v387_v25 = vsel %vm386_vm12, %v381_v20, %v383_v6  ;;  %v886_v6 = vld.sshfl [vmem:[#allocation1 + $0x10] sm:$0xff pattern:$0x73625140] }
 0x141   :  { %v392_v16 = vmul.f32 %v2032_v14, %v388_v19  ;;  %v391_v29 = vmul.f32 %v2043_v56, %v387_v25  ;;  %v885_v19 = vld.sshfl [vmem:[#allocation1 + $0x8] sm:$0xff pattern:$0x73625140] }
 0x143   :  { %v394_v30 = vadd.f32 %v392_v16, %v222_v22  ;;  %v393_v31 = vadd.f32 %v391_v29, %v221_v57  ;;  %v884_v22 = vld.sshfl [vmem:[#allocation1] sm:$0xff pattern:$0x73625140] }
 0x144   :  { %1244 = vrot.lane.b32.xlu2 %v1242_v23, %s1602_s25  ;;  %v98_v23 = vadd.s32 2, %v1994_v60  ;;  %s1484_s25 = sld [smem:[#allocation7 + $0x35]] }
 0x145   :  { %1201 = vrot.lane.b32.xlu1 %v1199_v21, %s1600_s22  ;;  %1191 = vrot.lane.b32.xlu0 %v1189_v27, %s1604_s29  ;;  %v97_v21 = vadd.s32 2, %v1999_v63 }
 0x146   :  { %v553_v48 = vpop.permute.xlu2 %552  ;;  %vm102_vm10 = vcmp.lt.s32.totalorder %v98_v23, 16 }
 0x147   :  { %vm101_vm11 = vcmp.lt.s32.totalorder %v97_v21, 16  ;;  %v2108_v25 = vsel %vm102_vm10, 1.0, %v1599_v2 }
 0x148   :  { %v2111_v27 = vsel %vm101_vm11, 1.0, %v1599_v2 }
 0x14c   :  { %1265 = vrot.lane.b32.xlu2 %v1263_v43, %s1601_s23  ;;  %s1477_s23 = sld [smem:[#allocation7 + $0x34]] }
 0x14d   :  { %1254 = vrot.lane.b32.xlu1 %v1252_v44, %s1605_s3  ;;  %1211 = vrot.lane.b32.xlu0 %v1209_v47, %s1603_s28  ;;  %v2124_v44 = vsel %vm114_vm14, 1.0, %v1599_v2  ;;  %v2127_v47 = vsel %vm113_vm15, 1.0, %v1599_v2 }
 0x14f   :  { %v469_v55 = vpop.permute.xlu1 %468  ;;  %v467_v59 = vpop.permute.xlu0 %466 }
 0x150   :  { %v473_v41 = vsel %vm190_vm4, %v469_v55, %v471_v51  ;;  %v472_v46 = vsel %vm190_vm4, %v467_v59, %v469_v55 }
 0x151   :  { %v477_v18 = vadd.f32 %v473_v41, %v307_v52  ;;  %v476_v1 = vadd.f32 %v472_v46, %v306_v54 }
 0x154   :  { %1295 = vrot.lane.b32.xlu2 %v1293_v0, %s1603_s28  ;;  %s1491_s28 = sld [smem:[#allocation7 + $0x36]] }
 0x155   :  { %1285 = vrot.lane.b32.xlu1 %v1283_v26, %s1600_s22  ;;  %1275 = vrot.lane.b32.xlu0 %v1273_v5, %s1604_s29  ;;  %v987_v26 = vstv %s1477_s23  ;;  %s1498_s29 = sld [smem:[#allocation7 + $0x37]] }
 0x156   :  { %v638_v20 = vpop.permute.xlu2 %637 }
 0x15c   :  { %803 = vrot.lane.b32.xlu2 %v1967_v34, %s1606_s6 }
 0x15d   :  { %807 = vrot.lane.b32.xlu1 %v1962_v7, %s1606_s6  ;;  %805 = vrot.lane.b32.xlu0 %v1965_v33, %s1606_s6 }
 0x15f   :  { %v551_v11 = vpop.permute.xlu1 %550  ;;  %v549_v36 = vpop.permute.xlu0 %548 }
 0x160   :  { %v556_v12 = vsel %vm554_vm9, %v551_v11, %v553_v48  ;;  %v555_v34 = vsel %vm554_vm9, %v549_v36, %v551_v11 }
 0x161   :  { %v560_v15 = vmul.f32 %v2093_v9, %v556_v12  ;;  %v559_v7 = vmul.f32 %v2096_v10, %v555_v34  ;;  %v988_v12 = vmul.f32 %v987_v26, %v1897_v24 }
 0x163   :  { %v562_v17 = vadd.f32 %v560_v15, %v394_v30  ;;  %v561_v33 = vadd.f32 %v559_v7, %v393_v31 }
 0x165   :  { %891 = vrot.lane.b32.xlu1 %v886_v6, %s1607_s8  ;;  %889 = vrot.lane.b32.xlu0 %v885_v19, %s1607_s8 }
 0x166   :  { %v723_v16 = vpop.permute.xlu2 %722 }
 0x16d   :  { %887 = vrot.lane.b32.xlu1 %v884_v22, %s1607_s8 }
 0x16e   :  { %v994_v43 = vpop.permute.xlu2 %993 }
 0x16f   :  { %v636_v57 = vpop.permute.xlu1 %635  ;;  %v634_v29 = vpop.permute.xlu0 %633  ;;  %v995_v5 = vrot.slane %v994_v43, 2 }
 0x170   :  { %v641_v30 = vsel %vm639_vm13, %v636_v57, %v638_v20  ;;  %v640_v31 = vsel %vm639_vm13, %v634_v29, %v636_v57 }
 0x171   :  { %v645_v32 = vmul.f32 %v2108_v25, %v641_v30  ;;  %v644_v35 = vmul.f32 %v2111_v27, %v640_v31  ;;  %v996_v15 = vsel %vm145_vm0, %v994_v43, %v995_v5 }
 0x173   :  { %v2117_v37 = vadd.f32 %v645_v32, %v477_v18  ;;  %v2119_v62 = vadd.f32 %v644_v35, %v476_v1  ;;  %v1070_v35 = vstv %s1484_s25 }
 0x176   :  { %v1015_v52 = vpop.permute.xlu2 %1014 }
 0x17e   :  { %v1077_v0 = vpop.permute.xlu2 %1076 }
 0x17f   :  { %v721_v28 = vpop.permute.xlu1 %720  ;;  %v719_v51 = vpop.permute.xlu0 %718  ;;  %v1078_v39 = vrot.slane %v1077_v0, 2 }
 0x180   :  { %v726_v38 = vsel %vm724_vm8, %v721_v28, %v723_v16  ;;  %v725_v8 = vsel %vm724_vm8, %v719_v51, %v721_v28 }
 0x181   :  { %v730_v60 = vmul.f32 %v2124_v44, %v726_v38  ;;  %v729_v63 = vmul.f32 %v2127_v47, %v725_v8 }
 0x183   :  { %v2133_v54 = vadd.f32 %v730_v60, %v562_v17  ;;  %v2135_v55 = vadd.f32 %v729_v63, %v561_v33  ;;  %v1016_v33 = vrot.slane %v1015_v52, 6  ;;  %v1071_v60 = vmul.f32 %v1070_v35, %v1936_v4 }
 0x185   :  { %v1017_v22 = vsel %vm167_vm2, %v1016_v33, %v1015_v52  ;;  %v1079_v52 = vsel %vm145_vm0, %v1077_v0, %v1078_v39 }
 0x186   :  { %v1098_v19 = vpop.permute.xlu2 %1097 }
 0x187   :  { %v951_v59 = vpop.permute.xlu1 %950  ;;  %v941_v41 = vpop.permute.xlu0 %940 }
 0x188   :  { %v942_v2 = vrot.slane %v941_v41, 6  ;;  %v952_v18 = vrot.slane %v951_v59, 6 }
 0x18a   :  { %v943_v46 = vsel %vm179_vm3, %v942_v2, %v941_v41  ;;  %v953_v48 = vsel %vm190_vm4, %v952_v18, %v951_v59  ;;  %v1099_v2 = vrot.slane %v1098_v19, 6 }
 0x18b   :  { %v945_v1 = vadd.f32 %v943_v46, %v1973_v3  ;;  %v998_v3 = vadd.f32 %v996_v15, %v988_v12  ;;  %v1154_v15 = vstv %s1491_s28 }
 0x18c   :  { %v1100_v4 = vsel %vm167_vm2, %v1099_v2, %v1098_v19  ;;  %v1155_v19 = vmul.f32 %v1154_v15, %v1983_v49 }
 0x18d   :  { %v955_v34 = vadd.f32 %v953_v48, %v945_v1  ;;  %v1081_v1 = vadd.f32 %v1079_v52, %v1071_v60  ;;  %v1238_v60 = vstv %s1498_s29 }
 0x18e   :  { %v1161_v28 = vpop.permute.xlu2 %1160  ;;  %v1239_v2 = vmul.f32 %v1238_v60, %v2022_v53 }
 0x18f   :  { %v1004_v58 = vpop.permute.xlu1 %1003  ;;  %v961_v61 = vpop.permute.xlu0 %960 }
 0x190   :  { %v1005_v11 = vrot.slane %v1004_v58, 2  ;;  %v962_v36 = vrot.slane %v961_v61, 6 }
 0x192   :  { %v963_v7 = vsel %vm201_vm5, %v962_v36, %v961_v61  ;;  %v1006_v6 = vsel %vm156_vm1, %v1004_v58, %v1005_v11 }
 0x193   :  { %v965_v17 = vadd.f32 %v963_v7, %v955_v34  ;;  %v1008_v20 = vadd.f32 %v1006_v6, %v998_v3  ;;  %v1162_v7 = vrot.slane %v1161_v28, 2 }
 0x195   :  { %967 = vst [vmem:[#allocation1] ss:$4 sm:$0xff] %v965_v17  ;;  %v1019_v29 = vadd.f32 %v1017_v22, %v1008_v20 }
 0x196   :  { %v1182_v48 = vpop.permute.xlu2 %1181 }
 0x197   :  { %v1036_v23 = vpop.permute.xlu1 %1035  ;;  %v1026_v21 = vpop.permute.xlu0 %1025 }
 0x198   :  { %v1027_v16 = vrot.slane %v1026_v21, 6  ;;  %v1037_v57 = vrot.slane %v1036_v23, 6 }
 0x19a   :  { %v1028_v24 = vsel %vm179_vm3, %v1027_v16, %v1026_v21  ;;  %v1038_v51 = vsel %vm190_vm4, %v1037_v57, %v1036_v23  ;;  %v1163_v21 = vsel %vm145_vm0, %v1161_v28, %v1162_v7  ;;  %v1183_v16 = vrot.slane %v1182_v48, 6 }
 0x19b   :  { %v1030_v32 = vadd.f32 %v1028_v24, %v1019_v29 }
 0x19c   :  { %v970_v30 = vld.sshfl [vmem:[#allocation1 + $0x10] sm:$0xff pattern:$0x73625140]  ;;  %v969_v31 = vld.sshfl [vmem:[#allocation1 + $0x8] sm:$0xff pattern:$0x73625140]  ;;  %v1184_v49 = vsel %vm167_vm2, %v1183_v16, %v1182_v48 }
 0x19d   :  { %975 = vrot.lane.b32.xlu0 %v970_v30, %s1608_s10  ;;  %973 = vrot.lane.b32.xlu2 %v969_v31, %s1608_s10  ;;  %v1040_v63 = vadd.f32 %v1038_v51, %v1030_v32  ;;  %v968_v18 = vld.sshfl [vmem:[#allocation1] sm:$0xff pattern:$0x73625140]  ;;  %v1165_v32 = vadd.f32 %v1163_v21, %v1155_v19 }
 0x19e   :  { %v1245_v57 = vpop.permute.xlu2 %1244 }
 0x19f   :  { %v1087_v42 = vpop.permute.xlu1 %1086  ;;  %v1046_v43 = vpop.permute.xlu0 %1045  ;;  %v1246_v51 = vrot.slane %v1245_v57, 2 }
 0x1a0   :  { %v1088_v38 = vrot.slane %v1087_v42, 2  ;;  %v1047_v8 = vrot.slane %v1046_v43, 6 }
 0x1a2   :  { %v1048_v59 = vsel %vm201_vm5, %v1047_v8, %v1046_v43  ;;  %v1089_v46 = vsel %vm156_vm1, %v1087_v42, %v1088_v38 }
 0x1a3   :  { %v1050_v41 = vadd.f32 %v1048_v59, %v1040_v63  ;;  %v1091_v26 = vadd.f32 %v1089_v46, %v1081_v1  ;;  %v1247_v1 = vsel %vm145_vm0, %v1245_v57, %v1246_v51 }
 0x1a5   :  { %971 = vrot.lane.b32.xlu2 %v968_v18, %s1608_s10  ;;  %1052 = vst [vmem:[#allocation1] ss:$4 sm:$0xff] %v1050_v41  ;;  %v1102_v11 = vadd.f32 %v1100_v4, %v1091_v26  ;;  %s1385_s10 = sshll.u32 %s2219_s2, 4  ;;  %s1386_s10 = int_to_ptr.hbm [resolvable:$true] %s1385_s10 }
 0x1a6   :  { %v1266_v41 = vpop.permute.xlu2 %1265 }
 0x1a7   :  { %v1118_v5 = vpop.permute.xlu1 %1117  ;;  %v1108_v58 = vpop.permute.xlu0 %1107 }
 0x1a8   :  { %v1109_v61 = vrot.slane %v1108_v58, 6  ;;  %v1119_v36 = vrot.slane %v1118_v5, 6 }
 0x1aa   :  { %v1110_v0 = vsel %vm179_vm3, %v1109_v61, %v1108_v58  ;;  %v1120_v6 = vsel %vm190_vm4, %v1119_v36, %v1118_v5  ;;  %v1267_v61 = vrot.slane %v1266_v41, 6 }
 0x1ab   :  { %v1112_v34 = vadd.f32 %v1110_v0, %v1102_v11  ;;  %v1249_v11 = vadd.f32 %v1247_v1, %v1239_v2 }
 0x1ac   :  { %v1054_v12 = vld.sshfl [vmem:[#allocation1 + $0x8] sm:$0xff pattern:$0x73625140]  ;;  %v1053_v30 = vld.sshfl [vmem:[#allocation1] sm:$0xff pattern:$0x73625140]  ;;  %v1268_v53 = vsel %vm167_vm2, %v1267_v61, %v1266_v41 }
 0x1ad   :  { %1058 = vrot.lane.b32.xlu2 %v1054_v12, %s1600_s22  ;;  %v1122_v23 = vadd.f32 %v1120_v6, %v1112_v34  ;;  %v1055_v31 = vld.sshfl [vmem:[#allocation1 + $0x10] sm:$0xff pattern:$0x73625140] }
 0x1ae   :  { %v1296_v6 = vpop.permute.xlu2 %1295 }
 0x1af   :  { %v1171_v17 = vpop.permute.xlu1 %1170  ;;  %v1128_v33 = vpop.permute.xlu0 %1127 }
 0x1b0   :  { %v1172_v3 = vrot.slane %v1171_v17, 2  ;;  %v1129_v20 = vrot.slane %v1128_v33, 6 }
 0x1b2   :  { %v1130_v22 = vsel %vm201_vm5, %v1129_v20, %v1128_v33  ;;  %v1173_v29 = vsel %vm156_vm1, %v1171_v17, %v1172_v3  ;;  %v1297_v20 = vrot.slane %v1296_v6, 6 }
 0x1b3   :  { %v1132_v24 = vadd.f32 %v1130_v22, %v1122_v23  ;;  %v1175_v35 = vadd.f32 %v1173_v29, %v1165_v32 }
 0x1b4   :  { %v1298_v57 = vsel %vm201_vm5, %v1297_v20, %v1296_v6 }
 0x1b5   :  { %1134 = vst [vmem:[#allocation1] ss:$4 sm:$0xff] %v1132_v24  ;;  %v1186_v8 = vadd.f32 %v1184_v49, %v1175_v35 }
 0x1b6   :  { %v804_v49 = vpop.permute.xlu2 %803 }
 0x1b7   :  { %v1202_v39 = vpop.permute.xlu1 %1201  ;;  %v1192_v42 = vpop.permute.xlu0 %1191 }
 0x1b8   :  { %v1193_v43 = vrot.slane %v1192_v42, 6  ;;  %v1203_v38 = vrot.slane %v1202_v39, 6 }
 0x1ba   :  { %v1194_v28 = vsel %vm179_vm3, %v1193_v43, %v1192_v42  ;;  %v1204_v26 = vsel %vm190_vm4, %v1203_v38, %v1202_v39 }
 0x1bb   :  { %v1196_v59 = vadd.f32 %v1194_v28, %v1186_v8 }
 0x1bc   :  { %v1137_v63 = vld.sshfl [vmem:[#allocation1 + $0x10] sm:$0xff pattern:$0x73625140]  ;;  %v1136_v52 = vld.sshfl [vmem:[#allocation1 + $0x8] sm:$0xff pattern:$0x73625140] }
 0x1bd   :  { %1142 = vrot.lane.b32.xlu1 %v1137_v63, %s1609_s13  ;;  %1140 = vrot.lane.b32.xlu0 %v1136_v52, %s1609_s13  ;;  %v1206_v4 = vadd.f32 %v1204_v26, %v1196_v59  ;;  %v1135_v12 = vld.sshfl [vmem:[#allocation1] sm:$0xff pattern:$0x73625140] }
 0x1bf   :  { %v1255_v46 = vpop.permute.xlu1 %1254  ;;  %v1212_v18 = vpop.permute.xlu0 %1211 }
 0x1c0   :  { %v1256_v5 = vrot.slane %v1255_v46, 2  ;;  %v1213_v58 = vrot.slane %v1212_v18, 6 }
 0x1c2   :  { %v1257_v48 = vsel %vm156_vm1, %v1255_v46, %v1256_v5  ;;  %v1214_v0 = vsel %vm201_vm5, %v1213_v58, %v1212_v18 }
 0x1c3   :  { %v1216_v36 = vadd.f32 %v1214_v0, %v1206_v4  ;;  %v1259_v34 = vadd.f32 %v1257_v48, %v1249_v11 }
 0x1c5   :  { %1060 = vrot.lane.b32.xlu0 %v1055_v31, %s1600_s22  ;;  %1138 = vrot.lane.b32.xlu1 %v1135_v12, %s1609_s13  ;;  %1218 = vst [vmem:[#allocation1] ss:$4 sm:$0xff] %v1216_v36  ;;  %v1270_v3 = vadd.f32 %v1268_v53, %v1259_v34 }
 0x1c7   :  { %v1286_v15 = vpop.permute.xlu1 %1285  ;;  %v1276_v7 = vpop.permute.xlu0 %1275 }
 0x1c8   :  { %v1287_v17 = vrot.slane %v1286_v15, 6  ;;  %v1277_v33 = vrot.slane %v1276_v7, 6 }
 0x1ca   :  { %v1278_v19 = vsel %vm179_vm3, %v1277_v33, %v1276_v7  ;;  %v1288_v21 = vsel %vm190_vm4, %v1287_v17, %v1286_v15 }
 0x1cb   :  { %v1280_v23 = vadd.f32 %v1278_v19, %v1270_v3 }
 0x1cc   :  { %v1221_v22 = vld.sshfl [vmem:[#allocation1 + $0x10] sm:$0xff pattern:$0x73625140]  ;;  %v1220_v16 = vld.sshfl [vmem:[#allocation1 + $0x8] sm:$0xff pattern:$0x73625140] }
 0x1cd   :  { %v1290_v24 = vadd.f32 %v1288_v21, %v1280_v23  ;;  %1226 = vrot.lane.b32.xlu0 %v1221_v22, %s1610_s15  ;;  %1224 = vrot.lane.b32.xlu2 %v1220_v16, %s1610_s15  ;;  %v1219_v31 = vld.sshfl [vmem:[#allocation1] sm:$0xff pattern:$0x73625140] }
 0x1cf   :  { %v1300_v29 = vadd.f32 %v1298_v57, %v1290_v24  ;;  %v806_v42 = vpop.permute.xlu0 %805  ;;  %v808_v43 = vpop.permute.xlu1 %807 }
 0x1d0   :  { %v810_v46 = vsel %vm216_vm6, %v806_v42, %v808_v43  ;;  %v809_v34 = vsel %vm216_vm6, %v804_v49, %v806_v42 }
 0x1d1   :  { %1302 = vst [vmem:[#allocation1] ss:$4 sm:$0xff] %v1300_v29  ;;  %v814_v5 = vmul.f32 %v2029_v13, %v810_v46 }
 0x1d3   :  { %v816_v36 = vadd.f32 %v814_v5, %v2117_v37  ;;  %v813_v37 = vmul.f32 %v2039_v45, %v809_v34  ;;  %v1372_v34 = vld [vmem:[#allocation3 + $0x8] sm:$0xf] }
 0x1d5   :  { %1056 = vrot.lane.b32.xlu0 %v1053_v30, %s1600_s22  ;;  %v815_v24 = vadd.f32 %v813_v37, %v2119_v62  ;;  %s1612_s22 = smov [#allocation8]  }
 0x1d6   :  { %s1383_s3 = sshll.u32 %s1612_s22, 4  ;;  %s1384_s3 = int_to_ptr.vmem [resolvable:$true] %s1383_s3 }
 0x1d7   :  { %v890_v28 = vpop.permute.xlu0 %889  ;;  %v892_v38 = vpop.permute.xlu1 %891 }
 0x1d8   :  { %v1305_v32 = vld.sshfl [vmem:[#allocation1 + $0x10] sm:$0xff pattern:$0x73625140]  ;;  %v1304_v35 = vld.sshfl [vmem:[#allocation1 + $0x8] sm:$0xff pattern:$0x73625140]  ;;  %v894_v1 = vsel %vm301_vm7, %v890_v28, %v892_v38 }
 0x1d9   :  { %1310 = vrot.lane.b32.xlu2 %v1305_v32, %s1611_s19  ;;  %1308 = vrot.lane.b32.xlu1 %v1304_v35, %s1611_s19  ;;  %v1303_v39 = vld.sshfl [vmem:[#allocation1] sm:$0xff pattern:$0x73625140]  ;;  %v898_v48 = vmul.f32 %v2066_v50, %v894_v1 }
 0x1db   :  { %v900_v13 = vadd.f32 %v898_v48, %v2133_v54 }
 0x1df   :  { %v888_v30 = vpop.permute.xlu1 %887 }
 0x1e0   :  { %v893_v50 = vsel %vm301_vm7, %v888_v30, %v890_v28  ;;  %vm1364_vm7 = vcmask 1041408  }
 0x1e1   :  { %1222 = vrot.lane.b32.xlu1 %v1219_v31, %s1610_s15  ;;  %1306 = vrot.lane.b32.xlu2 %v1303_v39, %s1611_s19  ;;  %v897_v19 = vmul.f32 %v2069_v40, %v893_v50 }
 0x1e3   :  { %v899_v31 = vadd.f32 %v897_v19, %v2135_v55 }
 0x1f7   :  { %v974_v51 = vpop.permute.xlu2 %973 }
 0x1ff   :  { %v972_v60 = vpop.permute.xlu2 %971 }
 0x207   :  { %v1059_v52 = vpop.permute.xlu2 %1058 }
 0x20f   :  { %v976_v8 = vpop.permute.xlu0 %975 }
 0x210   :  { %v978_v26 = vsel %vm386_vm12, %v974_v51, %v976_v8 }
 0x211   :  { %v982_v0 = vmul.f32 %v2032_v14, %v978_v26  ;;  %v977_v14 = vsel %vm386_vm12, %v972_v60, %v974_v51 }
 0x212   :  { %v981_v54 = vmul.f32 %v2043_v56, %v977_v14 }
 0x213   :  { %v984_v15 = vadd.f32 %v982_v0, %v816_v36  ;;  %v1360_v0 = vld [vmem:[#allocation3] sm:$0xf] }
 0x227   :  { %v1225_v2 = vpop.permute.xlu2 %1224 }
 0x22f   :  { %v1141_v63 = vpop.permute.xlu0 %1140  ;;  %v1143_v59 = vpop.permute.xlu1 %1142 }
 0x230   :  { %v1145_v61 = vsel %vm554_vm9, %v1141_v63, %v1143_v59 }
 0x231   :  { %v1149_v12 = vmul.f32 %v2093_v9, %v1145_v61 }
 0x233   :  { %v1311_v58 = vpop.permute.xlu2 %1310  ;;  %v1151_v6 = vadd.f32 %v1149_v12, %v984_v15  ;;  %v1369_v12 = vld [vmem:[#allocation3 + $0x4] sm:$0xf]  ;;  %v1375_v15 = vld [vmem:[#allocation3 + $0xc] sm:$0xf] }
 0x237   :  { %v1061_v41 = vpop.permute.xlu0 %1060  ;;  %v1139_v18 = vpop.permute.xlu1 %1138 }
 0x238   :  { %v1063_v53 = vsel %vm190_vm4, %v1059_v52, %v1061_v41  ;;  %v1144_v20 = vsel %vm554_vm9, %v1139_v18, %v1141_v63 }
 0x239   :  { %v1067_v9 = vadd.f32 %v1063_v53, %v900_v13  ;;  %v1148_v45 = vmul.f32 %v2096_v10, %v1144_v20 }
 0x23f   :  { %v1227_v4 = vpop.permute.xlu0 %1226 }
 0x240   :  { %v1229_v11 = vsel %vm639_vm13, %v1225_v2, %v1227_v4 }
 0x241   :  { %v1233_v7 = vmul.f32 %v2108_v25, %v1229_v11  ;;  %v1307_v25 = vpop.permute.xlu2 %1306 }
 0x243   :  { %v1235_v23 = vadd.f32 %v1233_v7, %v1067_v9 }
 0x247   :  { %v1057_v21 = vpop.permute.xlu0 %1056 }
 0x248   :  { %v1062_v29 = vsel %vm190_vm4, %v1057_v21, %v1059_v52 }
 0x249   :  { %v1066_v42 = vadd.f32 %v1062_v29, %v899_v31 }
 0x24b   :  { %v1309_v17 = vpop.permute.xlu1 %1308 }
 0x24c   :  { %v1313_v33 = vsel %vm724_vm8, %v1309_v17, %v1311_v58  ;;  %v1312_v16 = vsel %vm724_vm8, %v1307_v25, %v1309_v17 }
 0x24d   :  { %v1317_v3 = vmul.f32 %v2124_v44, %v1313_v33  ;;  %v983_v44 = vadd.f32 %v981_v54, %v815_v24  ;;  %v1316_v40 = vmul.f32 %v2127_v47, %v1312_v16 }
 0x24f   :  { %v1319_v22 = vadd.f32 %v1317_v3, %v1151_v6  ;;  %v1150_v39 = vadd.f32 %v1148_v45, %v983_v44 }
 0x251   :  { %v1321_v57 = vadd.f32 %v1319_v22, %v1235_v23  ;;  %v1318_v62 = vadd.f32 %v1316_v40, %v1150_v39 }
 0x253   :  { %v1506_v32 = vmul.f32 -1.442695, %v1321_v57  ;;  %v1223_v56 = vpop.permute.xlu1 %1222 }
 0x254   :  { %v1228_v35 = vsel %vm639_vm13, %v1223_v56, %v1225_v2 }
 0x255   :  { %1523 = vpow2.f32 %v1506_v32  ;;  %v1232_v49 = vmul.f32 %v2111_v27, %v1228_v35 }
 0x257   :  { %v1234_v43 = vadd.f32 %v1232_v49, %v1066_v42 }
 0x259   :  { %v1320_v10 = vadd.f32 %v1318_v62, %v1234_v43 }
 0x25b   :  { %v1524_v28 = vpop.eup %1523  ;;  %v1505_v51 = vmul.f32 -1.442695, %v1320_v10 }
 0x25c   :  { %v1329_v38 = vadd.f32 1.0, %v1524_v28 }
 0x25d   :  { %1525 = vpow2.f32 %v1505_v51 }
 0x25e   :  { %1527 = vrcp.f32 %v1329_v38  ;;  %v1356_v41 = vand.u32 2147483648, %v1329_v38  ;;  %vm1350_vm1 = vweird.f32 %v1329_v38  ;;  %v1354_v2 = vand.u32 2147483647, %v1329_v38 }
 0x260   :  { %v1357_v26 = vor.u32 1.1754944e-38, %v1356_v41  ;;  %vm1355_vm4 = vcmp.eq.f32.partialorder %v1354_v2, 8.507059e+37 }
 0x263   :  { %v1526_v55 = vpop.eup %1525 }
 0x264   :  { %v1528_v8 = vpop.eup %1527  ;;  %v1328_v47 = vadd.f32 1.0, %v1526_v55 }
 0x265   :  { %v1346_v60 = vmul.f32 %v1528_v8, %v1329_v38  ;;  %vm1351_vm0 = vweird.f32 %v1528_v8 }
 0x266   :  { %1529 = vrcp.f32 %v1328_v47  ;;  %vm1352_vm2 = vmor %vm1350_vm1, %vm1351_vm0  ;;  %v1341_v1 = vand.u32 2147483648, %v1328_v47  ;;  %v1339_v58 = vand.u32 2147483647, %v1328_v47  ;;  %vm1335_vm5 = vweird.f32 %v1328_v47 }
 0x267   :  { %v1347_v30 = vsub.f32 1.0, %v1346_v60 }
 0x268   :  { %v1342_v48 = vor.u32 1.1754944e-38, %v1341_v1  ;;  %vm1340_vm12 = vcmp.eq.f32.partialorder %v1339_v58, 8.507059e+37 }
 0x269   :  { %v1348_v63 = vmul.f32 %v1528_v8, %v1347_v30 }
 0x26b   :  { %v1349_v52 = vadd.f32 %v1528_v8, %v1348_v63 }
 0x26c   :  { %v1530_v59 = vpop.eup %1529 }
 0x26d   :  { %v1331_v27 = vmul.f32 %v1530_v59, %v1328_v47  ;;  %v1353_v18 = vsel %vm1352_vm2, %v1528_v8, %v1349_v52  ;;  %vm1336_vm3 = vweird.f32 %v1530_v59 }
 0x26e   :  { %v1358_v4 = vsel %vm1355_vm4, %v1357_v26, %v1353_v18  ;;  %vm1337_vm6 = vmor %vm1335_vm5, %vm1336_vm3 }
 0x26f   :  { %v1332_v46 = vsub.f32 1.0, %v1331_v27  ;;  %v1363_v36 = vrot.slane %v1358_v4, 6 }
 0x271   :  { %v1333_v5 = vmul.f32 %v1530_v59, %v1332_v46 }
 0x273   :  { %v1334_v61 = vadd.f32 %v1530_v59, %v1333_v5 }
 0x275   :  { %v1338_v11 = vsel %vm1337_vm6, %v1530_v59, %v1334_v61 }
 0x276   :  { %v1343_v53 = vsel %vm1340_vm12, %v1342_v48, %v1338_v11 }
 0x277   :  { %v1365_v13 = vsel %vm1364_vm7, %v1343_v53, %v1363_v36 }
 0x278   :  { %v1367_v7 = vmul.f32 %v1365_v13, %v1360_v0  ;;  %v1370_v17 = vmul.f32 %v1369_v12, %v1365_v13  ;;  %v1373_v50 = vmul.f32 %v1372_v34, %v1365_v13  ;;  %v1376_v14 = vmul.f32 %v1375_v15, %v1365_v13 }
 0x27a   :  { %1368 = vst [vmem:[#allocation8] sm:$0xf] %v1367_v7 }
 0x27b   :  { %1371 = vst [vmem:[#allocation8 + $0x4] sm:$0xf] %v1370_v17 }
 0x27c   :  { %1374 = vst [vmem:[#allocation8 + $0x8] sm:$0xf] %v1373_v50 }
 0x27d   :  { %1377 = vst [vmem:[#allocation8 + $0xc] sm:$0xf] %v1376_v14 }
 0x27e   :  { %1388 = dma.vmem_to_hbm [thread:$0]  %s1384_s3, 256, %s1386_s10, [#allocation5]  }
 0x27f   :  { %1595 = dma.done.wait [#allocation5], 256  }
 0x280   :  { %1596 = vsyncadd [#allocation5], 4294967040 }
 0x281   :  { %1393 = vsyncpa [#allocation4], 1 }
 0x282   :  { %1394 = vsyncpa [#allocation5], 1 }
 0x283   :  { %1395 = vsyncpa [#allocation6], 1 }

</bundles_post_ra>
